<compile_context>
chip_gen: v6e
topology: v6e:2x2x1
jax: 0.10.0
libtpu: 0.0.40
codegen_flags: <defaults>
</compile_context>

<pallas_src>
import functools

import jax
import jax.numpy as jnp
from jax.experimental import pallas as pl
from jax.experimental.pallas import tpu as pltpu


def _conv_stats_kernel(x_ref, w_ref, y_ref, stats_ref, *, kh, kw, hout, wout,
                       stride, cout8):
    """One batch image: conv (single im2col matmul) + partial BN stats.

    x_ref    : (Hp, Wp, Cin)        spatially zero-padded input (NHWC slice)
    w_ref    : (KH*KW*Cin, Cpad)    weights, Cout padded to a multiple of 128
    y_ref    : (Cout8, Hout*Wout)   fp32 conv output, channel-major (pre-BN)
    stats_ref: (Cout8, 2)           [sum, sum-of-squares] over this image
    """
    cin = x_ref.shape[-1]
    m = hout * wout

    def win(start, size):
        return pl.ds(start, size) if stride == 1 else pl.ds(start, size, stride)

    # im2col: KH*KW shifted windows (static ref-window loads) concatenated on
    # the contraction axis so the whole tap loop becomes ONE MXU matmul with
    # K = KH*KW*Cin instead of KH*KW tiny K=Cin matmuls.
    taps = []
    for i in range(kh):
        for j in range(kw):
            tap = x_ref[win(i, hout), win(j, wout), :]       # (Hout, Wout, Cin)
            taps.append(tap.reshape(m, cin))
    patches = jnp.concatenate(taps, axis=-1)                 # (M, KH*KW*Cin)

    y = jnp.dot(patches.astype(w_ref.dtype), w_ref[...],
                preferred_element_type=jnp.float32)          # (M, Cpad)

    # Channel-major layout: channels -> sublanes, spatial -> lanes.  Only the
    # real (rounded-to-8) channels are kept; padded channels are all-zero.
    yt = y.T[:cout8, :]                                      # (Cout8, M)
    y_ref[...] = yt

    # Partial BN statistics for this image; the tiny cross-batch reduction is
    # done in XLA glue so the batch grid axis stays fully "parallel".
    s = jnp.sum(yt, axis=1, keepdims=True)                   # (Cout8, 1)
    ss = jnp.sum(yt * yt, axis=1, keepdims=True)             # (Cout8, 1)
    stats_ref[...] = jnp.concatenate([s, ss], axis=1)        # (Cout8, 2)


def _bn_relu_kernel(y_ref, scale_ref, shift_ref, o_ref, *, cout):
    """Lane-dense fused per-channel scale/shift + ReLU on a (Cout8, tm) tile."""
    z = jnp.maximum(y_ref[...] * scale_ref[...] + shift_ref[...], 0.0)
    if cout < z.shape[0]:
        z = z[:cout, :]
    o_ref[...] = z.astype(o_ref.dtype)


def _pick_cols(m):
    """Largest lane-dense spatial tile dividing m (multiple of 128 if possible)."""
    for t in (4096, 2048, 1024, 512, 256, 128):
        if t <= m and m % t == 0:
            return t
    return m


def conv_block(x_nchw, weight, bias, gamma, beta, *, stride=1, eps=1e-5,
               mxu_dtype=None):
    """PyTorch-equivalent ConvBlock forward (training-mode BatchNorm)."""
    N, Cin, H, W = x_nchw.shape
    Cout, Cin_w, KH, KW = weight.shape
    assert Cin == Cin_w
    pad = KH // 2                      # ConvBlock uses padding = kernel_size//2
    Hout = (H + 2 * pad - KH) // stride + 1
    Wout = (W + 2 * pad - KW) // stride + 1
    Hp, Wp = H + 2 * pad, W + 2 * pad
    Cpad = ((Cout + 127) // 128) * 128   # matmul N-dim (MXU lane width)
    Cout8 = ((Cout + 7) // 8) * 8        # stored channels (sublane granule)
    M_img = Hout * Wout

    # Conv bias cancels exactly under batch-statistics BatchNorm -> drop it.
    del bias

    # --- layout glue (XLA): tiny input-side prep only ------------------------
    x_nhwc = jnp.transpose(x_nchw, (0, 2, 3, 1))
    x_pad = jnp.pad(x_nhwc, ((0, 0), (pad, pad), (pad, pad), (0, 0)))

    # OIHW -> (KH*KW*Cin, Cout), then pad Cout to a lane-dense multiple of 128.
    w2d = jnp.transpose(weight, (2, 3, 1, 0)).reshape(KH * KW * Cin, Cout)
    w2d = jnp.pad(w2d, ((0, 0), (0, Cpad - Cout)))
    if mxu_dtype is not None:          # bf16 operands recommended on v6e/v7x
        w2d = w2d.astype(mxu_dtype)

    # --- pass 1: conv + per-image partial BN stats (grid over batch) ---------
    conv_kernel = functools.partial(
        _conv_stats_kernel, kh=KH, kw=KW, hout=Hout, wout=Wout, stride=stride,
        cout8=Cout8)
    y, stats = pl.pallas_call(
        conv_kernel,
        out_shape=(jax.ShapeDtypeStruct((N, Cout8, M_img), jnp.float32),
                   jax.ShapeDtypeStruct((N, Cout8, 2), jnp.float32)),
        grid=(N,),
        in_specs=[
            pl.BlockSpec((None, Hp, Wp, Cin), lambda n: (n, 0, 0, 0)),
            pl.BlockSpec((KH * KW * Cin, Cpad), lambda n: (0, 0)),
        ],
        out_specs=(
            pl.BlockSpec((None, Cout8, M_img), lambda n: (n, 0, 0)),
            pl.BlockSpec((None, Cout8, 2), lambda n: (n, 0, 0)),
        ),
        compiler_params=pltpu.CompilerParams(
            dimension_semantics=("parallel",)),
    )(x_pad, w2d)

    # --- fold BN into one per-channel scale/shift (tiny (Cout8,) math) -------
    count = float(N * M_img)
    mean = jnp.sum(stats[:, :, 0], axis=0) / count
    var = jnp.maximum(jnp.sum(stats[:, :, 1], axis=0) / count - mean * mean,
                      0.0)
    gamma_p = jnp.pad(gamma.astype(jnp.float32), (0, Cout8 - Cout))
    beta_p = jnp.pad(beta.astype(jnp.float32), (0, Cout8 - Cout))
    scale = gamma_p * jax.lax.rsqrt(var + eps)
    shift = beta_p - mean * scale

    # --- pass 2: lane-dense normalize + ReLU, output already channel-major ---
    tm = _pick_cols(M_img)
    bn_kernel = functools.partial(_bn_relu_kernel, cout=Cout)
    out = pl.pallas_call(
        bn_kernel,
        out_shape=jax.ShapeDtypeStruct((N, Cout, M_img), x_nchw.dtype),
        grid=(N, M_img // tm),
        in_specs=[
            pl.BlockSpec((None, Cout8, tm), lambda n, i: (n, 0, i)),
            pl.BlockSpec((Cout8, 1), lambda n, i: (0, 0)),
            pl.BlockSpec((Cout8, 1), lambda n, i: (0, 0)),
        ],
        out_specs=pl.BlockSpec((None, Cout, tm), lambda n, i: (n, 0, i)),
        compiler_params=pltpu.CompilerParams(
            dimension_semantics=("parallel", "parallel")),
    )(y, scale.reshape(Cout8, 1), shift.reshape(Cout8, 1))

    # (N, Cout, Hout*Wout) -> (N, Cout, Hout, Wout): metadata-only reshape.
    return out.reshape(N, Cout, Hout, Wout)


def _reference(x_nchw, weight, bias, gamma, beta, *, stride=1, eps=1e-5):
    """Pure-JAX reference of the PyTorch forward (training-mode BN)."""
    pad = weight.shape[2] // 2
    y = jax.lax.conv_general_dilated(
        x_nchw, weight, (stride, stride),
        padding=[(pad, pad), (pad, pad)],
        dimension_numbers=("NCHW", "OIHW", "NCHW"),
    ) + bias[None, :, None, None]
    mean = jnp.mean(y, axis=(0, 2, 3), keepdims=True)
    var = jnp.mean((y - mean) ** 2, axis=(0, 2, 3), keepdims=True)
    y_hat = (y - mean) / jnp.sqrt(var + eps)
    return jnp.maximum(gamma[None, :, None, None] * y_hat
                       + beta[None, :, None, None], 0.0)


if __name__ == "__main__":
    # ConvBlock(in_channels=4, out_channels=8, kernel_size=3, stride=1)
    N, Cin, H, W = 2, 4, 16, 16
    Cout, K, stride = 8, 3, 1

    key = jax.random.PRNGKey(0)
    kx, kwt, kb, kg, kbt = jax.random.split(key, 5)

    x = jax.random.normal(kx, (N, Cin, H, W), dtype=jnp.float32)
    weight = jax.random.normal(kwt, (Cout, Cin, K, K), dtype=jnp.float32) * 0.1
    bias = jax.random.normal(kb, (Cout,), dtype=jnp.float32) * 0.1
    gamma = 1.0 + 0.1 * jax.random.normal(kg, (Cout,), dtype=jnp.float32)
    beta = 0.1 * jax.random.normal(kbt, (Cout,), dtype=jnp.float32)

    out = conv_block(x, weight, bias, gamma, beta, stride=stride)
    out = jax.block_until_ready(out)

    ref = _reference(x, weight, bias, gamma, beta, stride=stride)
    assert out.shape == ref.shape == (N, Cout, H, W)
    err = float(jnp.max(jnp.abs(out - ref)))
    assert jnp.allclose(out, ref, rtol=2e-3, atol=2e-3), err

    print("KERNEL_OK")
</pallas_src>

<mosaic_0001>
module attributes {stable_mosaic.version = 11 : i64} {
  func.func @_conv_stats_kernel(%arg0: i32, %arg1: memref<1x18x18x4xf32, #tpu.memory_space<vmem>>, %arg2: memref<36x128xf32, #tpu.memory_space<vmem>>, %arg3: memref<1x8x256xf32, #tpu.memory_space<vmem>>, %arg4: memref<1x8x2xf32, #tpu.memory_space<vmem>>) attributes {dimension_semantics = [#tpu.dimension_semantics<parallel>], iteration_bounds = array<i64: 2>, scalar_prefetch = 0 : i64, scratch_operands = 0 : i64, tpu.core_type = #tpu.core_type<tc>, window_params = [{transform_indices = @transform_0, window_bounds = array<i64: 1, 18, 18, 4>}, {pipeline_mode = #tpu.pipeline_mode<synchronous>, transform_indices = @transform_1, window_bounds = array<i64: 36, 128>}, {transform_indices = @transform_2, window_bounds = array<i64: 1, 8, 256>}, {transform_indices = @transform_3, window_bounds = array<i64: 1, 8, 2>}]} {
    %c0 = arith.constant 0 : index
    %c0_0 = arith.constant 0 : index
    %c0_1 = arith.constant 0 : index
    %c0_2 = arith.constant 0 : index
    %0 = vector.load %arg1[%c0, %c0_0, %c0_1, %c0_2] : memref<1x18x18x4xf32, #tpu.memory_space<vmem>>, vector<1x16x16x4xf32>
    %1 = vector.shape_cast %0 : vector<1x16x16x4xf32> to vector<16x16x4xf32>
    %2 = vector.shape_cast %1 : vector<16x16x4xf32> to vector<256x4xf32>
    %c0_3 = arith.constant 0 : index
    %c0_4 = arith.constant 0 : index
    %c1 = arith.constant 1 : index
    %c0_5 = arith.constant 0 : index
    %3 = vector.load %arg1[%c0_3, %c0_4, %c1, %c0_5] : memref<1x18x18x4xf32, #tpu.memory_space<vmem>>, vector<1x16x16x4xf32>
    %4 = vector.shape_cast %3 : vector<1x16x16x4xf32> to vector<16x16x4xf32>
    %5 = vector.shape_cast %4 : vector<16x16x4xf32> to vector<256x4xf32>
    %c0_6 = arith.constant 0 : index
    %c0_7 = arith.constant 0 : index
    %c2 = arith.constant 2 : index
    %c0_8 = arith.constant 0 : index
    %6 = vector.load %arg1[%c0_6, %c0_7, %c2, %c0_8] : memref<1x18x18x4xf32, #tpu.memory_space<vmem>>, vector<1x16x16x4xf32>
    %7 = vector.shape_cast %6 : vector<1x16x16x4xf32> to vector<16x16x4xf32>
    %8 = vector.shape_cast %7 : vector<16x16x4xf32> to vector<256x4xf32>
    %c0_9 = arith.constant 0 : index
    %c1_10 = arith.constant 1 : index
    %c0_11 = arith.constant 0 : index
    %c0_12 = arith.constant 0 : index
    %9 = vector.load %arg1[%c0_9, %c1_10, %c0_11, %c0_12] : memref<1x18x18x4xf32, #tpu.memory_space<vmem>>, vector<1x16x16x4xf32>
    %10 = vector.shape_cast %9 : vector<1x16x16x4xf32> to vector<16x16x4xf32>
    %11 = vector.shape_cast %10 : vector<16x16x4xf32> to vector<256x4xf32>
    %c0_13 = arith.constant 0 : index
    %c1_14 = arith.constant 1 : index
    %c1_15 = arith.constant 1 : index
    %c0_16 = arith.constant 0 : index
    %12 = vector.load %arg1[%c0_13, %c1_14, %c1_15, %c0_16] : memref<1x18x18x4xf32, #tpu.memory_space<vmem>>, vector<1x16x16x4xf32>
    %13 = vector.shape_cast %12 : vector<1x16x16x4xf32> to vector<16x16x4xf32>
    %14 = vector.shape_cast %13 : vector<16x16x4xf32> to vector<256x4xf32>
    %c0_17 = arith.constant 0 : index
    %c1_18 = arith.constant 1 : index
    %c2_19 = arith.constant 2 : index
    %c0_20 = arith.constant 0 : index
    %15 = vector.load %arg1[%c0_17, %c1_18, %c2_19, %c0_20] : memref<1x18x18x4xf32, #tpu.memory_space<vmem>>, vector<1x16x16x4xf32>
    %16 = vector.shape_cast %15 : vector<1x16x16x4xf32> to vector<16x16x4xf32>
    %17 = vector.shape_cast %16 : vector<16x16x4xf32> to vector<256x4xf32>
    %c0_21 = arith.constant 0 : index
    %c2_22 = arith.constant 2 : index
    %c0_23 = arith.constant 0 : index
    %c0_24 = arith.constant 0 : index
    %18 = vector.load %arg1[%c0_21, %c2_22, %c0_23, %c0_24] : memref<1x18x18x4xf32, #tpu.memory_space<vmem>>, vector<1x16x16x4xf32>
    %19 = vector.shape_cast %18 : vector<1x16x16x4xf32> to vector<16x16x4xf32>
    %20 = vector.shape_cast %19 : vector<16x16x4xf32> to vector<256x4xf32>
    %c0_25 = arith.constant 0 : index
    %c2_26 = arith.constant 2 : index
    %c1_27 = arith.constant 1 : index
    %c0_28 = arith.constant 0 : index
    %21 = vector.load %arg1[%c0_25, %c2_26, %c1_27, %c0_28] : memref<1x18x18x4xf32, #tpu.memory_space<vmem>>, vector<1x16x16x4xf32>
    %22 = vector.shape_cast %21 : vector<1x16x16x4xf32> to vector<16x16x4xf32>
    %23 = vector.shape_cast %22 : vector<16x16x4xf32> to vector<256x4xf32>
    %c0_29 = arith.constant 0 : index
    %c2_30 = arith.constant 2 : index
    %c2_31 = arith.constant 2 : index
    %c0_32 = arith.constant 0 : index
    %24 = vector.load %arg1[%c0_29, %c2_30, %c2_31, %c0_32] : memref<1x18x18x4xf32, #tpu.memory_space<vmem>>, vector<1x16x16x4xf32>
    %25 = vector.shape_cast %24 : vector<1x16x16x4xf32> to vector<16x16x4xf32>
    %26 = vector.shape_cast %25 : vector<16x16x4xf32> to vector<256x4xf32>
    %27 = tpu.concatenate %2, %5, %8, %11, %14, %17, %20, %23, %26 in 1 : vector<256x4xf32>, vector<256x4xf32>, vector<256x4xf32>, vector<256x4xf32>, vector<256x4xf32>, vector<256x4xf32>, vector<256x4xf32>, vector<256x4xf32>, vector<256x4xf32> -> vector<256x36xf32>
    %c0_33 = arith.constant 0 : index
    %c0_34 = arith.constant 0 : index
    %28 = vector.load %arg2[%c0_33, %c0_34] : memref<36x128xf32, #tpu.memory_space<vmem>>, vector<36x128xf32>
    %cst = arith.constant dense<0.000000e+00> : vector<256x128xf32>
    %29 = tpu.matmul %27, %28, %cst {dimension_numbers = #tpu.dot_dimension_numbers<[1], [0], [0], [1], [0, 0, 1, 1], [], []>} : vector<256x36xf32>, vector<36x128xf32>, vector<256x128xf32> -> vector<256x128xf32>
    %30 = tpu.transpose %29, [1, 0] : vector<256x128xf32> -> vector<128x256xf32>
    %31 = vector.extract_strided_slice %30 {offsets = [0, 0], sizes = [8, 256], strides = [1, 1]} : vector<128x256xf32> to vector<8x256xf32>
    %c0_35 = arith.constant 0 : index
    %c0_36 = arith.constant 0 : index
    %c0_37 = arith.constant 0 : index
    %32 = vector.load %arg3[%c0_35, %c0_36, %c0_37] : memref<1x8x256xf32, #tpu.memory_space<vmem>>, vector<1x8x256xf32>
    %33 = vector.shape_cast %32 : vector<1x8x256xf32> to vector<8x256xf32>
    %34 = vector.shape_cast %31 : vector<8x256xf32> to vector<1x8x256xf32>
    tpu.vector_store %arg3[%c0_35, %c0_36, %c0_37], %34 {strides = array<i32>} : memref<1x8x256xf32, #tpu.memory_space<vmem>>, vector<1x8x256xf32>,
    %cst_38 = arith.constant dense<0.000000e+00> : vector<8xf32>
    %35 = vector.multi_reduction <add>, %31, %cst_38 [1] : vector<8x256xf32> to vector<8xf32>
    %36 = vector.shape_cast %35 : vector<8xf32> to vector<8x1xf32>
    %37 = arith.mulf %31, %31 : vector<8x256xf32>
    %cst_39 = arith.constant dense<0.000000e+00> : vector<8xf32>
    %38 = vector.multi_reduction <add>, %37, %cst_39 [1] : vector<8x256xf32> to vector<8xf32>
    %39 = vector.shape_cast %38 : vector<8xf32> to vector<8x1xf32>
    %40 = tpu.concatenate %36, %39 in 1 : vector<8x1xf32>, vector<8x1xf32> -> vector<8x2xf32>
    %c0_40 = arith.constant 0 : index
    %c0_41 = arith.constant 0 : index
    %c0_42 = arith.constant 0 : index
    %41 = vector.load %arg4[%c0_40, %c0_41, %c0_42] : memref<1x8x2xf32, #tpu.memory_space<vmem>>, vector<1x8x2xf32>
    %42 = vector.shape_cast %41 : vector<1x8x2xf32> to vector<8x2xf32>
    %43 = vector.shape_cast %40 : vector<8x2xf32> to vector<1x8x2xf32>
    tpu.vector_store %arg4[%c0_40, %c0_41, %c0_42], %43 {strides = array<i32>} : memref<1x8x2xf32, #tpu.memory_space<vmem>>, vector<1x8x2xf32>,
    return
  }
  func.func @transform_0(%arg0: i32) -> (i32, i32, i32, i32) {
    %c0_i32 = arith.constant 0 : i32
    %c0_i32_0 = arith.constant 0 : i32
    %c0_i32_1 = arith.constant 0 : i32
    %c0_i32_2 = arith.constant 0 : i32
    return %arg0, %c0_i32, %c0_i32_0, %c0_i32_1 : i32, i32, i32, i32
  }
  func.func @transform_1(%arg0: i32) -> (i32, i32) {
    %c0_i32 = arith.constant 0 : i32
    %c0_i32_0 = arith.constant 0 : i32
    %c0_i32_1 = arith.constant 0 : i32
    return %c0_i32, %c0_i32_0 : i32, i32
  }
  func.func @transform_2(%arg0: i32) -> (i32, i32, i32) {
    %c0_i32 = arith.constant 0 : i32
    %c0_i32_0 = arith.constant 0 : i32
    %c0_i32_1 = arith.constant 0 : i32
    return %arg0, %c0_i32, %c0_i32_0 : i32, i32, i32
  }
  func.func @transform_3(%arg0: i32) -> (i32, i32, i32) {
    %c0_i32 = arith.constant 0 : i32
    %c0_i32_0 = arith.constant 0 : i32
    %c0_i32_1 = arith.constant 0 : i32
    return %arg0, %c0_i32, %c0_i32_0 : i32, i32, i32
  }
}

</mosaic_0001>

<bundles_post_ra>
// kernel: tpu_custom_call.1
= control target key start
LH: loop header
LB: loop body
LE: loop exit
PB: predicated region body
PF: predicated region fallthrough
CT: control target
= control target key end

     0   :  { %9 = vsyncpa [#allocation3], 0  ;;  %s4215_s0 = inlined_call_operand.vmem [shape: f32[2,18,18,4], index: 0, kind: input, shape index: {}]   ;;  %s4216_s1 = inlined_call_operand.vmem [shape: f32[36,128], index: 1, kind: input, shape index: {}]   ;;  %s4217_s2 = inlined_call_operand.hbm [shape: f32[2,8,256], index: 2, kind: output, shape index: {0}]   ;;  %s4218_s3 = inlined_call_operand.vmem [shape: f32[2,8,2], index: 3, kind: output, shape index: {1}]  }
   0x1   :  { %11 = vsyncpa [#allocation3 + $0x1], 0  ;;  %s2754_s12 = smov 0   ;;  %s2756_s13 = smov 0  }
   0x2   :  { %s2758_s14 = smov 0   ;;  %s2760_s15 = smov 0  }
   0x3 LB: > { %s2775_s16 = sadd.s32 4294967295, %s2723_s15   ;;  %s2272_s17 = sadd.s32 4294967294, %s2723_s15   ;;  %s2723_s15 = sphi %s2760_s15, %s4377_s15   ;;  %s2719_s14 = sphi %s2758_s14, %s4376_s14   ;;  %s2715_s13 = sphi %s2756_s13, %s4375_s13   ;;  %s2711_s12 = sphi %s2754_s12, %s4374_s12  }
   0x4   : > { %s2779_s18 = sadd.s32 1, %s2723_s15   ;;  %s71_s19 = sadd.s32 1, %s2719_s14 }
   0x5   : > { %s68_s20 = ssub.s32 %s2723_s15, %s2779_s18  ;;  %p81_p0 = scmp.ne.s32.totalorder %s2719_s14, %s2715_s13 }
   0x6   : > { %p69_p1 = scmp.eq.s32.totalorder %s68_s20, 0  ;;  %p82_p2 = scmp.eq.s32.totalorder %s2775_s16, 1 }
   0x7   : > { %p87_p3 = scmp.ne.s32.totalorder %s2715_s13, %s2711_s12  ;;  %p88_p4 = scmp.eq.s32.totalorder %s2272_s17, 1 }
   0x8   : > { %s2790_s21 = scalar_select %p69_p1, %s2719_s14, %s71_s19  }
   0x9   : > { %p2792_p5 = por %p82_p2, %p81_p0  ;;  %p2796_p6 = por %p88_p4, %p87_p3 }
   0xa   : > { %p2275_p7 = scmp.ge.s32.totalorder %s2723_s15, 1  ;;  %p143_p8 = scmp.lt.s32.totalorder %s2723_s15, 3 }
   0xc   : > { %p144_p9 = pnand %p2275_p7, %p143_p8 }
   0xe   : > { %147 = sbr.rel (%p144_p9) target bundleno = 1059 (0x423), region = 28 }
  0x13   : > { %p171_p10 = scmp.lt.s32.totalorder %s2775_s16, 1  ;;  %s2725_s29 = smov 4   ;;  %vm1494_vm0 = vcmask 31744   ;;  %vm1527_vm1 = vcmask 64512   ;;  %vm1860_vm2 = vcmask 1043456   ;;  %vm1560_vm3 = vcmask 97280  }
  0x14   : > { %s2726_s30 = smov 8   ;;  %s2727_s4 = smov 12   ;;  %vm1593_vm4 = vcmask 130048   ;;  %vm1626_vm5 = vcmask 162816   ;;  %vm1659_vm6 = vcmask 195584   ;;  %vm1692_vm7 = vcmask 228352  }
  0x15   : > { %s2804_s24 = scalar_select %p171_p10, %s2775_s16, 1  ;;  %vm1725_vm8 = vcmask 261120   ;;  %vm1763_vm9 = vcmask 293888  }
  0x16   : > { %s2728_s5 = smov 16   ;;  %s2729_s6 = smov 20  }
  0x17   : > { %s2615_s25 = smul.u32 432, %s2804_s24  ;;  %s2730_s7 = smov 24  }
  0x18   : > { %s2731_s17 = smov 28   ;;  %s2733_s19 = smov [#allocation2]  }
  0x19   : > { %s2810_s28 = scalar_lea.vmem %s4215_s0, %s2615_s25  ;;  %s2667_s20 = sshll.u32 %s2733_s19, 4  ;;  %s2668_s20 = int_to_ptr.vmem [resolvable:$false] %s2667_s20 }
  0x1a   : > { %v2813_v0 = vld [vmem:[%s2810_s28 + $0x19] sm:$0xff]  ;;  %v212_v1 = vld [vmem:[%s2810_s28 + $0x1] sm:$0xff]  ;;  %v213_v3 = vld [vmem:[%s2810_s28 + $0x9] sm:$0xff]  ;;  %s2669_s25 = scalar_lea.vmem %s2668_s20, 512 }
  0x1b   : > { %506 = vrot.lane.b32.xlu1 %v2813_v0, %s2725_s29  ;;  %502 = vrot.lane.b32.xlu0 %v212_v1, %s2725_s29  ;;  %v2820_v2 = vld [vmem:[%s2810_s28 + $0x21] sm:$0xff]  ;;  %v2827_v4 = vld [vmem:[%s2810_s28 + $0x39] sm:$0xff] }
  0x1c   : > { %v2830_v5 = vld [vmem:[%s2810_s28 + $0x31] sm:$0xff]  ;;  %v2840_v7 = vld [vmem:[%s2810_s28 + $0x49] sm:$0xff]  ;;  %v2850_v9 = vld [vmem:[%s2810_s28 + $0x61] sm:$0xff] }
  0x1d   : > { %v2837_v6 = vld [vmem:[%s2810_s28 + $0x51] sm:$0xff]  ;;  %v2847_v8 = vld [vmem:[%s2810_s28 + $0x69] sm:$0xff]  ;;  %v2857_v10 = vld [vmem:[%s2810_s28 + $0x81] sm:$0xff] }
  0x1e   : > { %v2860_v11 = vld [vmem:[%s2810_s28 + $0x79] sm:$0xff]  ;;  %v2870_v13 = vld [vmem:[%s2810_s28 + $0x91] sm:$0xff]  ;;  %v2878_v15 = vld [vmem:[%s2810_s28 + $0xa9] sm:$0xff] }
  0x1f   : > { %508 = vrot.lane.b32.xlu1 %v2820_v2, %s2725_s29  ;;  %504 = vrot.lane.b32.xlu0 %v213_v3, %s2725_s29  ;;  %v2867_v12 = vld [vmem:[%s2810_s28 + $0x99] sm:$0xff]  ;;  %v227_v14 = vld [vmem:[%s2810_s28 + $0xb1] sm:$0xff] }
  0x20   : > { %v229_v16 = vld [vmem:[%s2810_s28 + $0xc9] sm:$0xff]  ;;  %v228_v17 = vld [vmem:[%s2810_s28 + $0xc1] sm:$0xff]  ;;  %v2891_v19 = vld [vmem:[%s2810_s28 + $0xd9] sm:$0xff] }
  0x21   : > { %v2888_v18 = vld [vmem:[%s2810_s28 + $0xe1] sm:$0xff]  ;;  %v2898_v20 = vld [vmem:[%s2810_s28 + $0xf9] sm:$0xff]  ;;  %v2901_v21 = vld [vmem:[%s2810_s28 + $0xf1] sm:$0xff] }
  0x22   : > { %4264 = vst [vmem:[#allocation5_spill] sm:$0xff] %v2898_v20  ;;  %4265 = vst [vmem:[#allocation6_spill] sm:$0xff] %v2901_v21  ;;  %v2908_v22 = vld [vmem:[%s2810_s28 + $0x111] sm:$0xff]  ;;  %v2911_v23 = vld [vmem:[%s2810_s28 + $0x109] sm:$0xff] }
  0x23   : > { %512 = vrot.lane.b32.xlu1 %v2827_v4, %s2725_s29  ;;  %510 = vrot.lane.b32.xlu0 %v2830_v5, %s2725_s29  ;;  %4266 = vst [vmem:[#allocation7_spill] sm:$0xff] %v2908_v22  ;;  %4267 = vst [vmem:[#allocation8_spill] sm:$0xff] %v2911_v23  ;;  %v237_v24 = vld [vmem:[%s2810_s28 + $0x129] sm:$0xff]  ;;  %v2919_v25 = vld [vmem:[%s2810_s28 + $0x121] sm:$0xff] }
  0x24   : > { %4268 = vst [vmem:[#allocation9_spill] sm:$0xff] %v2919_v25  ;;  %v239_v26 = vld [vmem:[%s2810_s28 + $0x141] sm:$0xff]  ;;  %v238_v27 = vld [vmem:[%s2810_s28 + $0x139] sm:$0xff]  ;;  %v240_v29 = vld [vmem:[%s2810_s28 + $0x151] sm:$0xff] }
  0x25   : > { %v241_v28 = vld [vmem:[%s2810_s28 + $0x159] sm:$0xff]  ;;  %v243_v30 = vld [vmem:[%s2810_s28 + $0x171] sm:$0xff]  ;;  %v242_v31 = vld [vmem:[%s2810_s28 + $0x169] sm:$0xff] }
  0x26   : > { %v245_v32 = vld [vmem:[%s2810_s28 + $0xa] sm:$0xff]  ;;  %v244_v33 = vld [vmem:[%s2810_s28 + $0x2] sm:$0xff]  ;;  %v2944_v35 = vld [vmem:[%s2810_s28 + $0x1a] sm:$0xff] }
  0x27   : > { %516 = vrot.lane.b32.xlu1 %v2837_v6, %s2725_s29  ;;  %514 = vrot.lane.b32.xlu0 %v2840_v7, %s2725_s29  ;;  %v2941_v34 = vld [vmem:[%s2810_s28 + $0x22] sm:$0xff]  ;;  %v2951_v36 = vld [vmem:[%s2810_s28 + $0x3a] sm:$0xff] }
  0x28   : > { %4269 = vst [vmem:[#allocation10_spill] sm:$0xff] %v2951_v36  ;;  %v2954_v37 = vld [vmem:[%s2810_s28 + $0x32] sm:$0xff]  ;;  %v2964_v39 = vld [vmem:[%s2810_s28 + $0x4a] sm:$0xff]  ;;  %v2974_v41 = vld [vmem:[%s2810_s28 + $0x62] sm:$0xff] }
  0x29   : > { %4270 = vst [vmem:[#allocation11_spill] sm:$0xff] %v2954_v37  ;;  %v2961_v38 = vld [vmem:[%s2810_s28 + $0x52] sm:$0xff]  ;;  %4272 = vst [vmem:[#allocation13_spill] sm:$0xff] %v2964_v39  ;;  %v2971_v40 = vld [vmem:[%s2810_s28 + $0x6a] sm:$0xff] }
  0x2a   : > { %4271 = vst [vmem:[#allocation12_spill] sm:$0xff] %v2961_v38  ;;  %4273 = vst [vmem:[#allocation14_spill] sm:$0xff] %v2971_v40  ;;  %v255_v42 = vld [vmem:[%s2810_s28 + $0x82] sm:$0xff]  ;;  %v254_v43 = vld [vmem:[%s2810_s28 + $0x7a] sm:$0xff] }
  0x2b   : > { %520 = vrot.lane.b32.xlu1 %v2847_v8, %s2725_s29  ;;  %518 = vrot.lane.b32.xlu0 %v2850_v9, %s2725_s29  ;;  %4274 = vst [vmem:[#allocation15_spill] sm:$0xff] %v2974_v41  ;;  %v257_v44 = vld [vmem:[%s2810_s28 + $0x9a] sm:$0xff]  ;;  %v256_v45 = vld [vmem:[%s2810_s28 + $0x92] sm:$0xff] }
  0x2c   : > { %v259_v46 = vld [vmem:[%s2810_s28 + $0xb2] sm:$0xff]  ;;  %v258_v47 = vld [vmem:[%s2810_s28 + $0xaa] sm:$0xff]  ;;  %v260_v49 = vld [vmem:[%s2810_s28 + $0xc2] sm:$0xff] }
  0x2d   : > { %v261_v48 = vld [vmem:[%s2810_s28 + $0xca] sm:$0xff]  ;;  %v2997_v50 = vld [vmem:[%s2810_s28 + $0xe2] sm:$0xff]  ;;  %v3000_v51 = vld [vmem:[%s2810_s28 + $0xda] sm:$0xff] }
  0x2e   : > { %v3007_v52 = vld [vmem:[%s2810_s28 + $0xfa] sm:$0xff]  ;;  %v3010_v53 = vld [vmem:[%s2810_s28 + $0xf2] sm:$0xff]  ;;  %v3020_v55 = vld [vmem:[%s2810_s28 + $0x10a] sm:$0xff] }
  0x2f   : > { %524 = vrot.lane.b32.xlu1 %v2857_v10, %s2725_s29  ;;  %522 = vrot.lane.b32.xlu0 %v2860_v11, %s2725_s29  ;;  %4275 = vst [vmem:[#allocation16_spill] sm:$0xff] %v3007_v52  ;;  %4276 = vst [vmem:[#allocation17_spill] sm:$0xff] %v3010_v53  ;;  %v3017_v54 = vld [vmem:[%s2810_s28 + $0x112] sm:$0xff]  ;;  %v3027_v56 = vld [vmem:[%s2810_s28 + $0x12a] sm:$0xff] }
  0x30   : > { %4277 = vst [vmem:[#allocation18_spill] sm:$0xff] %v3017_v54  ;;  %4278 = vst [vmem:[#allocation19_spill] sm:$0xff] %v3020_v55  ;;  %v3030_v57 = vld [vmem:[%s2810_s28 + $0x122] sm:$0xff]  ;;  %v270_v59 = vld [vmem:[%s2810_s28 + $0x13a] sm:$0xff] }
  0x31   : > { %4279 = vst [vmem:[#allocation20_spill] sm:$0xff] %v3027_v56  ;;  %4280 = vst [vmem:[#allocation21_spill] sm:$0xff] %v3030_v57  ;;  %v271_v58 = vld [vmem:[%s2810_s28 + $0x142] sm:$0xff]  ;;  %v273_v62 = vld [vmem:[%s2810_s28 + $0x15a] sm:$0xff] }
  0x32   : > { %v272_v63 = vld [vmem:[%s2810_s28 + $0x152] sm:$0xff] }
  0x33   : > { %528 = vrot.lane.b32.xlu1 %v2867_v12, %s2725_s29  ;;  %526 = vrot.lane.b32.xlu0 %v2870_v13, %s2725_s29 }
  0x37   : > { %532 = vrot.lane.b32.xlu1 %v227_v14, %s2725_s29  ;;  %530 = vrot.lane.b32.xlu0 %v2878_v15, %s2725_s29  ;;  %v275_v14 = vld [vmem:[%s2810_s28 + $0x172] sm:$0xff] }
  0x3b   : > { %536 = vrot.lane.b32.xlu1 %v229_v16, %s2725_s29  ;;  %534 = vrot.lane.b32.xlu0 %v228_v17, %s2725_s29  ;;  %v274_v16 = vld [vmem:[%s2810_s28 + $0x16a] sm:$0xff] }
  0x3f   : > { %540 = vrot.lane.b32.xlu1 %v2888_v18, %s2725_s29  ;;  %538 = vrot.lane.b32.xlu0 %v2891_v19, %s2725_s29 }
  0x43   : > { %544 = vrot.lane.b32.xlu1 %v2898_v20, %s2725_s29  ;;  %542 = vrot.lane.b32.xlu0 %v2901_v21, %s2725_s29 }
  0x47   : > { %548 = vrot.lane.b32.xlu1 %v2908_v22, %s2725_s29  ;;  %546 = vrot.lane.b32.xlu0 %v2911_v23, %s2725_s29  ;;  %v210_v22 = vld [vmem:[%s2810_s28 + $0x168] sm:$0xff] }
  0x4b   : > { %552 = vrot.lane.b32.xlu1 %v237_v24, %s2725_s29  ;;  %550 = vrot.lane.b32.xlu0 %v2919_v25, %s2725_s29 }
  0x4f   : > { %556 = vrot.lane.b32.xlu1 %v239_v26, %s2725_s29  ;;  %554 = vrot.lane.b32.xlu0 %v238_v27, %s2725_s29 }
  0x53   : > { %560 = vrot.lane.b32.xlu1 %v241_v28, %s2725_s29  ;;  %558 = vrot.lane.b32.xlu0 %v240_v29, %s2725_s29  ;;  %v3065_v28 = vld [vmem:[%s2810_s28 + $0x18] sm:$0xff]  ;;  %v3068_v29 = vld [vmem:[%s2810_s28 + $0x20] sm:$0xff] }
  0x54   : > { %4285 = vst [vmem:[#allocation26_spill] sm:$0xff] %v3065_v28  ;;  %4286 = vst [vmem:[#allocation27_spill] sm:$0xff] %v3068_v29 }
  0x57   : > { %564 = vrot.lane.b32.xlu1 %v243_v30, %s2725_s29  ;;  %562 = vrot.lane.b32.xlu0 %v242_v31, %s2725_s29 }
  0x5b   : > { %632 = vrot.lane.b32.xlu1 %v245_v32, %s2726_s30  ;;  %630 = vrot.lane.b32.xlu0 %v244_v33, %s2726_s30  ;;  %v3079_v32 = vld [vmem:[%s2810_s28 + $0x38] sm:$0xff]  ;;  %v3082_v33 = vld [vmem:[%s2810_s28 + $0x30] sm:$0xff] }
  0x5f   : > { %636 = vrot.lane.b32.xlu1 %v2941_v34, %s2726_s30  ;;  %634 = vrot.lane.b32.xlu0 %v2944_v35, %s2726_s30 }
  0x63   : > { %640 = vrot.lane.b32.xlu1 %v2951_v36, %s2726_s30  ;;  %638 = vrot.lane.b32.xlu0 %v2954_v37, %s2726_s30  ;;  %v3223_v36 = vld [vmem:[%s2810_s28 + $0x140] sm:$0xff]  ;;  %v3226_v37 = vld [vmem:[%s2810_s28 + $0x138] sm:$0xff] }
  0x67   : > { %644 = vrot.lane.b32.xlu1 %v2961_v38, %s2726_s30  ;;  %642 = vrot.lane.b32.xlu0 %v2964_v39, %s2726_s30  ;;  %v3211_v38 = vld [vmem:[%s2810_s28 + $0x128] sm:$0xff]  ;;  %v3214_v39 = vld [vmem:[%s2810_s28 + $0x120] sm:$0xff] }
  0x6b   : > { %648 = vrot.lane.b32.xlu1 %v2971_v40, %s2726_s30  ;;  %646 = vrot.lane.b32.xlu0 %v2974_v41, %s2726_s30  ;;  %v3158_v40 = vld [vmem:[%s2810_s28 + $0xc0] sm:$0xff]  ;;  %v3197_v41 = vld [vmem:[%s2810_s28 + $0x110] sm:$0xff] }
  0x6c   : > { %4292 = vst [vmem:[#allocation33_spill] sm:$0xff] %v3158_v40 }
  0x6f   : > { %652 = vrot.lane.b32.xlu1 %v255_v42, %s2726_s30  ;;  %650 = vrot.lane.b32.xlu0 %v254_v43, %s2726_s30 }
  0x73   : > { %656 = vrot.lane.b32.xlu1 %v257_v44, %s2726_s30  ;;  %654 = vrot.lane.b32.xlu0 %v256_v45, %s2726_s30  ;;  %v3093_v44 = vld [vmem:[%s2810_s28 + $0x50] sm:$0xff]  ;;  %v3096_v45 = vld [vmem:[%s2810_s28 + $0x48] sm:$0xff] }
  0x77   : > { %660 = vrot.lane.b32.xlu1 %v259_v46, %s2726_s30  ;;  %658 = vrot.lane.b32.xlu0 %v258_v47, %s2726_s30  ;;  %v193_v46 = vld [vmem:[%s2810_s28 + $0x98] sm:$0xff]  ;;  %v192_v47 = vld [vmem:[%s2810_s28 + $0x90] sm:$0xff] }
  0x7b   : > { %664 = vrot.lane.b32.xlu1 %v261_v48, %s2726_s30  ;;  %662 = vrot.lane.b32.xlu0 %v260_v49, %s2726_s30 }
  0x7f   : > { %668 = vrot.lane.b32.xlu1 %v2997_v50, %s2726_s30  ;;  %666 = vrot.lane.b32.xlu0 %v3000_v51, %s2726_s30 }
  0x83   : > { %672 = vrot.lane.b32.xlu1 %v3007_v52, %s2726_s30  ;;  %670 = vrot.lane.b32.xlu0 %v3010_v53, %s2726_s30 }
  0x87   : > { %676 = vrot.lane.b32.xlu1 %v3017_v54, %s2726_s30  ;;  %674 = vrot.lane.b32.xlu0 %v3020_v55, %s2726_s30  ;;  %v211_v55 = vld [vmem:[%s2810_s28 + $0x170] sm:$0xff] }
  0x8b   : > { %680 = vrot.lane.b32.xlu1 %v3027_v56, %s2726_s30  ;;  %678 = vrot.lane.b32.xlu0 %v3030_v57, %s2726_s30  ;;  %v3200_v57 = vld [vmem:[%s2810_s28 + $0x108] sm:$0xff] }
  0x8d   : > { %v3038_v60 = vpop.permute.xlu1 %506  ;;  %v3040_v61 = vpop.permute.xlu0 %502 }
  0x8e   : > { %4281 = vst [vmem:[#allocation22_spill] sm:$0xff] %v3038_v60  ;;  %4282 = vst [vmem:[#allocation23_spill] sm:$0xff] %v3040_v61  ;;  %v3126_v60 = vld [vmem:[%s2810_s28 + $0x78] sm:$0xff] }
  0x8f   : > { %684 = vrot.lane.b32.xlu1 %v271_v58, %s2726_s30  ;;  %682 = vrot.lane.b32.xlu0 %v270_v59, %s2726_s30  ;;  %v3105_v58 = vld [vmem:[%s2810_s28 + $0x68] sm:$0xff]  ;;  %v3108_v59 = vld [vmem:[%s2810_s28 + $0x60] sm:$0xff] }
  0x91   : > { %v3046_v1 = vpop.permute.xlu1 %508  ;;  %v3048_v3 = vpop.permute.xlu0 %504 }
  0x92   : > { %4283 = vst [vmem:[#allocation24_spill] sm:$0xff] %v3046_v1  ;;  %4284 = vst [vmem:[#allocation25_spill] sm:$0xff] %v3048_v3 }
  0x93   : > { %688 = vrot.lane.b32.xlu1 %v273_v62, %s2726_s30  ;;  %686 = vrot.lane.b32.xlu0 %v272_v63, %s2726_s30 }
  0x95   : > { %v3054_v17 = vpop.permute.xlu1 %512  ;;  %v3056_v24 = vpop.permute.xlu0 %510 }
  0x97   : > { %692 = vrot.lane.b32.xlu1 %v275_v14, %s2726_s30  ;;  %690 = vrot.lane.b32.xlu0 %v274_v16, %s2726_s30  ;;  %v195_v14 = vld [vmem:[%s2810_s28 + $0xb0] sm:$0xff]  ;;  %v194_v16 = vld [vmem:[%s2810_s28 + $0xa8] sm:$0xff]  ;;  %s2732_s30 = smov 32  }
  0x99   : > { %v3060_v26 = vpop.permute.xlu1 %516  ;;  %v3062_v27 = vpop.permute.xlu0 %514 }
  0x9b   : > { %760 = vrot.lane.b32.xlu1 %v3068_v29, %s2727_s4  ;;  %758 = vrot.lane.b32.xlu0 %v3065_v28, %s2727_s4  ;;  %v3123_v28 = vld [vmem:[%s2810_s28 + $0x80] sm:$0xff] }
  0x9d   : > { %v3074_v30 = vpop.permute.xlu1 %520  ;;  %v3076_v31 = vpop.permute.xlu0 %518 }
  0x9f   : > { %764 = vrot.lane.b32.xlu1 %v3079_v32, %s2727_s4  ;;  %762 = vrot.lane.b32.xlu0 %v3082_v33, %s2727_s4 }
  0xa1   : > { %v3088_v42 = vpop.permute.xlu1 %524  ;;  %v3090_v43 = vpop.permute.xlu0 %522 }
  0xa3   : > { %768 = vrot.lane.b32.xlu1 %v3093_v44, %s2727_s4  ;;  %766 = vrot.lane.b32.xlu0 %v3096_v45, %s2727_s4 }
  0xa5   : > { %v529_v48 = vpop.permute.xlu1 %528  ;;  %v527_v49 = vpop.permute.xlu0 %526 }
  0xa6   : > { %v3111_v62 = vsel %vm1494_vm0, %v193_v46, %v529_v48  ;;  %v3114_v63 = vsel %vm1494_vm0, %v192_v47, %v527_v49 }
  0xa7   : > { %772 = vrot.lane.b32.xlu1 %v3105_v58, %s2727_s4  ;;  %770 = vrot.lane.b32.xlu0 %v3108_v59, %s2727_s4 }
  0xa9   : > { %v533_v29 = vpop.permute.xlu1 %532  ;;  %v531_v1 = vpop.permute.xlu0 %530 }
  0xaa   : > { %v3129_v48 = vsel %vm1494_vm0, %v195_v14, %v533_v29  ;;  %v3132_v49 = vsel %vm1494_vm0, %v194_v16, %v531_v1 }
  0xab   : > { %776 = vrot.lane.b32.xlu1 %v3123_v28, %s2727_s4  ;;  %774 = vrot.lane.b32.xlu0 %v3126_v60, %s2727_s4 }
  0xad   : > { %v3138_v3 = vpop.permute.xlu1 %536  ;;  %v3140_v61 = vpop.permute.xlu0 %534 }
  0xae   : > { %4287 = vst [vmem:[#allocation28_spill] sm:$0xff] %v3138_v3  ;;  %4288 = vst [vmem:[#allocation29_spill] sm:$0xff] %v3140_v61  ;;  %v3155_v61 = vld [vmem:[%s2810_s28 + $0xc8] sm:$0xff] }
  0xaf   : > { %780 = vrot.lane.b32.xlu1 %v193_v46, %s2727_s4  ;;  %778 = vrot.lane.b32.xlu0 %v192_v47, %s2727_s4  ;;  %4291 = vst [vmem:[#allocation32_spill] sm:$0xff] %v3155_v61 }
  0xb1   : > { %v3144_v29 = vpop.permute.xlu1 %540  ;;  %v3146_v1 = vpop.permute.xlu0 %538 }
  0xb2   : > { %4289 = vst [vmem:[#allocation30_spill] sm:$0xff] %v3144_v29  ;;  %4290 = vst [vmem:[#allocation31_spill] sm:$0xff] %v3146_v1 }
  0xb3   : > { %784 = vrot.lane.b32.xlu1 %v195_v14, %s2727_s4  ;;  %782 = vrot.lane.b32.xlu0 %v194_v16, %s2727_s4  ;;  %v3169_v14 = vld [vmem:[%s2810_s28 + $0xe0] sm:$0xff]  ;;  %v3172_v16 = vld [vmem:[%s2810_s28 + $0xd8] sm:$0xff] }
  0xb4   : > { %4293 = vst [vmem:[#allocation34_spill] sm:$0xff] %v3169_v14  ;;  %4294 = vst [vmem:[#allocation35_spill] sm:$0xff] %v3172_v16 }
  0xb5   : > { %v3150_v56 = vpop.permute.xlu1 %544  ;;  %v3152_v3 = vpop.permute.xlu0 %542 }
  0xb7   : > { %788 = vrot.lane.b32.xlu1 %v3155_v61, %s2727_s4  ;;  %786 = vrot.lane.b32.xlu0 %v3158_v40, %s2727_s4  ;;  %v3183_v61 = vld [vmem:[%s2810_s28 + $0xf8] sm:$0xff]  ;;  %v3186_v40 = vld [vmem:[%s2810_s28 + $0xf0] sm:$0xff] }
  0xb9   : > { %v3164_v46 = vpop.permute.xlu1 %548  ;;  %v3166_v47 = vpop.permute.xlu0 %546 }
  0xbb   : > { %792 = vrot.lane.b32.xlu1 %v3169_v14, %s2727_s4  ;;  %790 = vrot.lane.b32.xlu0 %v3172_v16, %s2727_s4 }
  0xbd   : > { %v3178_v29 = vpop.permute.xlu1 %552  ;;  %v3180_v1 = vpop.permute.xlu0 %550 }
  0xbf   : > { %796 = vrot.lane.b32.xlu1 %v3183_v61, %s2727_s4  ;;  %794 = vrot.lane.b32.xlu0 %v3186_v40, %s2727_s4 }
  0xc1   : > { %v3192_v14 = vpop.permute.xlu1 %556  ;;  %v3194_v16 = vpop.permute.xlu0 %554 }
  0xc2   : > { %4295 = vst [vmem:[#allocation36_spill] sm:$0xff] %v3194_v16  ;;  %v3246_v16 = vld [vmem:[%s2810_s28 + $0x150] sm:$0xff] }
  0xc3   : > { %800 = vrot.lane.b32.xlu1 %v3197_v41, %s2727_s4  ;;  %798 = vrot.lane.b32.xlu0 %v3200_v57, %s2727_s4  ;;  %4303 = vst [vmem:[#allocation44_spill] sm:$0xff] %v3246_v16 }
  0xc5   : > { %v3206_v25 = vpop.permute.xlu1 %560  ;;  %v3208_v54 = vpop.permute.xlu0 %558 }
  0xc6   : > { %4296 = vst [vmem:[#allocation37_spill] sm:$0xff] %v3206_v25  ;;  %4297 = vst [vmem:[#allocation38_spill] sm:$0xff] %v3208_v54  ;;  %v3243_v25 = vld [vmem:[%s2810_s28 + $0x158] sm:$0xff] }
  0xc7   : > { %804 = vrot.lane.b32.xlu1 %v3211_v38, %s2727_s4  ;;  %802 = vrot.lane.b32.xlu0 %v3214_v39, %s2727_s4  ;;  %4302 = vst [vmem:[#allocation43_spill] sm:$0xff] %v3243_v25 }
  0xc9   : > { %v565_v23 = vpop.permute.xlu1 %564  ;;  %v563_v52 = vpop.permute.xlu0 %562 }
  0xca   : > { %v3229_v53 = vsel %vm1494_vm0, %v211_v55, %v565_v23  ;;  %v3232_v20 = vsel %vm1494_vm0, %v210_v22, %v563_v52 }
  0xcb   : > { %4298 = vst [vmem:[#allocation39_spill] sm:$0xff] %v3229_v53  ;;  %4299 = vst [vmem:[#allocation40_spill] sm:$0xff] %v3232_v20  ;;  %808 = vrot.lane.b32.xlu1 %v3223_v36, %s2727_s4  ;;  %806 = vrot.lane.b32.xlu0 %v3226_v37, %s2727_s4  ;;  %v1500_v20 = vsel %vm1494_vm0, %v3079_v32, %v3054_v17  ;;  %v1499_v53 = vsel %vm1494_vm0, %v3082_v33, %v3056_v24 }
  0xcc   : > { %v1501_v17 = vsel %vm1494_vm0, %v3096_v45, %v3062_v27 }
  0xcd   : > { %v3238_v21 = vpop.permute.xlu1 %632  ;;  %v3240_v54 = vpop.permute.xlu0 %630 }
  0xce   : > { %4300 = vst [vmem:[#allocation41_spill] sm:$0xff] %v3238_v21  ;;  %4301 = vst [vmem:[#allocation42_spill] sm:$0xff] %v3240_v54  ;;  %v2310_v21 = vld [vmem:[%s2810_s28 + $0x188] sm:$0xff]  ;;  %v2309_v54 = vld [vmem:[%s2810_s28 + $0x180] sm:$0xff] }
  0xcf   : > { %812 = vrot.lane.b32.xlu1 %v3243_v25, %s2727_s4  ;;  %810 = vrot.lane.b32.xlu0 %v3246_v16, %s2727_s4 }
  0xd1   : > { %v3252_v23 = vpop.permute.xlu1 %636  ;;  %v3254_v52 = vpop.permute.xlu0 %634 }
  0xd2   : > { %4304 = vst [vmem:[#allocation45_spill] sm:$0xff] %v3252_v23  ;;  %4305 = vst [vmem:[#allocation46_spill] sm:$0xff] %v3254_v52 }
  0xd3   : > { %816 = vrot.lane.b32.xlu1 %v211_v55, %s2727_s4  ;;  %814 = vrot.lane.b32.xlu0 %v210_v22, %s2727_s4  ;;  %v1502_v22 = vsel %vm1494_vm0, %v3093_v44, %v3060_v26 }
  0xd5   : > { %v641_v16 = vpop.permute.xlu1 %640  ;;  %v639_v25 = vpop.permute.xlu0 %638 }
  0xd6   : > { %v3267_v23 = vsel %vm1527_vm1, %v1500_v20, %v641_v16  ;;  %v3270_v55 = vsel %vm1527_vm1, %v1499_v53, %v639_v25  ;;  %v1503_v53 = vsel %vm1494_vm0, %v3108_v59, %v3076_v31 }
  0xd7   : > { %820 = vrot.lane.b32.xlu1 %v2310_v21, %s2727_s4  ;;  %818 = vrot.lane.b32.xlu0 %v2309_v54, %s2727_s4  ;;  %v1504_v21 = vsel %vm1494_vm0, %v3105_v58, %v3074_v30 }
  0xd9   : > { %v645_v24 = vpop.permute.xlu1 %644  ;;  %v643_v52 = vpop.permute.xlu0 %642 }
  0xda   : > { %v3281_v20 = vsel %vm1527_vm1, %v1502_v22, %v645_v24  ;;  %v3284_v25 = vsel %vm1527_vm1, %v1501_v17, %v643_v52 }
  0xdb   : > { %888 = vrot.lane.b32.xlu1 %v2820_v2, %s2728_s5  ;;  %886 = vrot.lane.b32.xlu0 %v2813_v0, %s2728_s5  ;;  %v1506_v0 = vsel %vm1494_vm0, %v3123_v28, %v3088_v42  ;;  %v1505_v2 = vsel %vm1494_vm0, %v3126_v60, %v3090_v43 }
  0xdd   : > { %v649_v54 = vpop.permute.xlu1 %648  ;;  %v647_v26 = vpop.permute.xlu0 %646 }
  0xde   : > { %v3297_v27 = vsel %vm1527_vm1, %v1504_v21, %v649_v54  ;;  %v3300_v16 = vsel %vm1527_vm1, %v1503_v53, %v647_v26 }
  0xdf   : > { %892 = vrot.lane.b32.xlu1 %v2827_v4, %s2728_s5  ;;  %890 = vrot.lane.b32.xlu0 %v2830_v5, %s2728_s5 }
  0xe1   : > { %v653_v30 = vpop.permute.xlu1 %652  ;;  %v651_v31 = vpop.permute.xlu0 %650 }
  0xe2   : > { %v3313_v52 = vsel %vm1527_vm1, %v1506_v0, %v653_v30  ;;  %v3316_v22 = vsel %vm1527_vm1, %v1505_v2, %v651_v31 }
  0xe3   : > { %896 = vrot.lane.b32.xlu1 %v2837_v6, %s2728_s5  ;;  %894 = vrot.lane.b32.xlu0 %v2840_v7, %s2728_s5 }
  0xe5   : > { %v657_v17 = vpop.permute.xlu1 %656  ;;  %v655_v42 = vpop.permute.xlu0 %654 }
  0xe6   : > { %v3324_v24 = vsel %vm1527_vm1, %v3111_v62, %v657_v17  ;;  %v3328_v43 = vsel %vm1527_vm1, %v3114_v63, %v655_v42 }
  0xe7   : > { %900 = vrot.lane.b32.xlu1 %v2847_v8, %s2728_s5  ;;  %898 = vrot.lane.b32.xlu0 %v2850_v9, %s2728_s5 }
  0xe9   : > { %v661_v21 = vpop.permute.xlu1 %660  ;;  %v659_v53 = vpop.permute.xlu0 %658 }
  0xea   : > { %v3336_v54 = vsel %vm1527_vm1, %v3129_v48, %v661_v21  ;;  %v3340_v62 = vsel %vm1527_vm1, %v3132_v49, %v659_v53 }
  0xeb   : > { %904 = vrot.lane.b32.xlu1 %v2857_v10, %s2728_s5  ;;  %902 = vrot.lane.b32.xlu0 %v2860_v11, %s2728_s5  ;;  %v1516_v10 = vsel %vm1494_vm0, %v3183_v61, %v3150_v56  ;;  %v1515_v11 = vsel %vm1494_vm0, %v3186_v40, %v3152_v3 }
  0xed   : > { %v3346_v8 = vpop.permute.xlu1 %664  ;;  %v3348_v63 = vpop.permute.xlu0 %662 }
  0xef   : > { %908 = vrot.lane.b32.xlu1 %v2867_v12, %s2728_s5  ;;  %906 = vrot.lane.b32.xlu0 %v2870_v13, %s2728_s5 }
  0xf1   : > { %v3354_v9 = vpop.permute.xlu1 %668  ;;  %v3356_v48 = vpop.permute.xlu0 %666 }
  0xf3   : > { %918 = vrot.lane.b32.xlu1 %v2891_v19, %s2728_s5  ;;  %910 = vrot.lane.b32.xlu0 %v2878_v15, %s2728_s5  ;;  %v1518_v15 = vsel %vm1494_vm0, %v3197_v41, %v3164_v46  ;;  %v1517_v19 = vsel %vm1494_vm0, %v3200_v57, %v3166_v47 }
  0xf5   : > { %v673_v12 = vpop.permute.xlu1 %672  ;;  %v671_v13 = vpop.permute.xlu0 %670 }
  0xf6   : > { %v3369_v49 = vsel %vm1527_vm1, %v1516_v10, %v673_v12  ;;  %v3372_v26 = vsel %vm1527_vm1, %v1515_v11, %v671_v13  ;;  %v4309_v10 = vld [vmem:[#allocation38_spill] sm:$0xff]  ;;  %v4310_v11 = vld [vmem:[#allocation44_spill] sm:$0xff] }
  0xf7   : > { %1014 = vrot.lane.b32.xlu1 %v2944_v35, %s2729_s6  ;;  %920 = vrot.lane.b32.xlu0 %v2888_v18, %s2728_s5  ;;  %v1520_v18 = vsel %vm1494_vm0, %v3211_v38, %v3178_v29  ;;  %v1519_v35 = vsel %vm1494_vm0, %v3214_v39, %v3180_v1  ;;  %v1523_v12 = vsel %vm1494_vm0, %v4310_v11, %v4309_v10  ;;  %v4316_v10 = vld [vmem:[#allocation11_spill] sm:$0xff] }
  0xf9   : > { %v677_v56 = vpop.permute.xlu1 %676  ;;  %v675_v3 = vpop.permute.xlu0 %674 }
  0xfa   : > { %v3385_v0 = vsel %vm1527_vm1, %v1518_v15, %v677_v56  ;;  %v3388_v2 = vsel %vm1527_vm1, %v1517_v19, %v675_v3  ;;  %v1760_v56 = vld [vmem:[%s4216_s1 + $0x10] sm:$0xff] }
  0xfb   : > { %1016 = vrot.lane.b32.xlu1 %v2941_v34, %s2729_s6  ;;  %1046 = vrot.lane.b32.xlu0 %v3000_v51, %s2729_s6  ;;  %v1522_v34 = vsel %vm1494_vm0, %v3223_v36, %v3192_v14  ;;  %v4306_v51 = vld [vmem:[#allocation36_spill] sm:$0xff]  ;;  %v4308_v14 = vld [vmem:[#allocation43_spill] sm:$0xff] }
  0xfc   : > { %v1521_v29 = vsel %vm1494_vm0, %v3226_v37, %v4306_v51  ;;  %v1758_v51 = vld [vmem:[%s4216_s1] sm:$0xff] }
  0xfd   : > { %v681_v46 = vpop.permute.xlu1 %680  ;;  %v679_v47 = vpop.permute.xlu0 %678 }
  0xfe   : > { %v3401_v30 = vsel %vm1527_vm1, %v1520_v18, %v681_v46  ;;  %v3404_v31 = vsel %vm1527_vm1, %v1519_v35, %v679_v47  ;;  %v4311_v35 = vld [vmem:[#allocation39_spill] sm:$0xff]  ;;  %v4312_v47 = vld [vmem:[#allocation40_spill] sm:$0xff] }
  0xff   : > { %1142 = vrot.lane.b32.xlu1 %v3082_v33, %s2730_s7  ;;  %1048 = vrot.lane.b32.xlu0 %v2997_v50, %s2729_s6  ;;  %v1762_v50 = vld [vmem:[%s4216_s1 + $0x20] sm:$0xf] }
 0x100   : > { %2547 = vmatprep.subr.msk.mxu0 %vm1860_vm2, %v1762_v50  ;;  %2605 = vmatprep.subr.msk.mxu1 %vm1860_vm2, %v1762_v50  ;;  %v4307_v33 = vld [vmem:[#allocation37_spill] sm:$0xff] }
 0x101   : > { %v685_v1 = vpop.permute.xlu1 %684  ;;  %v683_v17 = vpop.permute.xlu0 %682  ;;  %v1524_v53 = vsel %vm1494_vm0, %v4308_v14, %v4307_v33  ;;  %2548 = vmatpush3.msk.msra.mxu0 %vm1860_vm2, %v1762_v50  ;;  %2610 = vmatpush3.msk.msra.mxu1 %vm1860_vm2, %v1762_v50 }
 0x102   : > { %v3417_v42 = vsel %vm1527_vm1, %v1522_v34, %v685_v1  ;;  %v3420_v21 = vsel %vm1527_vm1, %v1521_v29, %v683_v17  ;;  %v4313_v34 = vld [vmem:[#allocation6_spill] sm:$0xff]  ;;  %v4314_v17 = vld [vmem:[#allocation5_spill] sm:$0xff] }
 0x103   : > { %1144 = vrot.lane.b32.xlu1 %v3079_v32, %s2730_s7  ;;  %1174 = vrot.lane.b32.xlu0 %v3186_v40, %s2730_s7  ;;  %v1761_v40 = vld [vmem:[%s4216_s1 + $0x18] sm:$0xff] }
 0x104   : > { %2549 = vmatprep.subr.mxu0 %v1761_v40  ;;  %2606 = vmatprep.subr.mxu1 %v1761_v40 }
 0x105   : > { %v689_v13 = vpop.permute.xlu1 %688  ;;  %v687_v32 = vpop.permute.xlu0 %686  ;;  %2550 = vmatpush3.msra.mxu0 %v1761_v40  ;;  %2611 = vmatpush3.msra.mxu1 %v1761_v40 }
 0x106   : > { %v3439_v15 = vsel %vm1527_vm1, %v1524_v53, %v689_v13  ;;  %v3442_v19 = vsel %vm1527_vm1, %v1523_v12, %v687_v32  ;;  %2551 = vmatprep.subr.mxu0 %v1760_v56  ;;  %2607 = vmatprep.subr.mxu1 %v1760_v56  ;;  %v4315_v53 = vld [vmem:[#allocation17_spill] sm:$0xff] }
 0x107   : > { %1270 = vrot.lane.b32.xlu1 %v2830_v5, %s2731_s17  ;;  %1176 = vrot.lane.b32.xlu0 %v3183_v61, %s2730_s7  ;;  %v1759_v61 = vld [vmem:[%s4216_s1 + $0x8] sm:$0xff] }
 0x108   : > { %2552 = vmatpush3.msra.mxu0 %v1760_v56  ;;  %2612 = vmatpush3.msra.mxu1 %v1760_v56 }
 0x109   : > { %v693_v3 = vpop.permute.xlu1 %692  ;;  %v691_v18 = vpop.permute.xlu0 %690  ;;  %2553 = vmatprep.subr.mxu0 %v1759_v61  ;;  %2608 = vmatprep.subr.mxu1 %v1759_v61 }
 0x10a   : > { %v3453_v46 = vsel %vm1527_vm1, %v4311_v35, %v693_v3  ;;  %v3457_v5 = vsel %vm1527_vm1, %v4312_v47, %v691_v18  ;;  %2554 = vmatpush3.msra.mxu0 %v1759_v61  ;;  %2613 = vmatpush3.msra.mxu1 %v1759_v61  ;;  %v4317_v18 = vld [vmem:[#allocation10_spill] sm:$0xff] }
 0x10b   : > { %922 = vrot.lane.b32.xlu1 %v4313_v34, %s2728_s5  ;;  %1302 = vrot.lane.b32.xlu0 %v4313_v34, %s2731_s17 }
 0x10c   : > { %2555 = vmatprep.subr.mxu0 %v1758_v51  ;;  %2609 = vmatprep.subr.mxu1 %v1758_v51 }
 0x10d   : > { %v3469_v29 = vpop.permute.xlu1 %760  ;;  %v3471_v1 = vpop.permute.xlu0 %758  ;;  %2556 = vmatpush3.msra.mxu0 %v1758_v51  ;;  %2614 = vmatpush3.msra.mxu1 %v1758_v51 }
 0x10f   : > { %1304 = vrot.lane.b32.xlu1 %v4314_v17, %s2731_s17  ;;  %1272 = vrot.lane.b32.xlu0 %v2827_v4, %s2731_s17 }
 0x111   : > { %v3477_v50 = vpop.permute.xlu1 %764  ;;  %v3479_v33 = vpop.permute.xlu0 %762 }
 0x113   : > { %1430 = vrot.lane.b32.xlu1 %v4315_v53, %s2732_s30  ;;  %1398 = vrot.lane.b32.xlu0 %v4316_v10, %s2732_s30 }
 0x115   : > { %v769_v12 = vpop.permute.xlu1 %768  ;;  %v767_v13 = vpop.permute.xlu0 %766 }
 0x116   : > { %v3487_v32 = vsel %vm1560_vm3, %v3267_v23, %v769_v12  ;;  %v3491_v4 = vsel %vm1560_vm3, %v3270_v55, %v767_v13  ;;  %v4325_v12 = vld [vmem:[#allocation7_spill] sm:$0xff] }
 0x117   : > { %1018 = vrot.lane.b32.xlu1 %v4316_v10, %s2729_s6  ;;  %924 = vrot.lane.b32.xlu0 %v4314_v17, %s2728_s5 }
 0x119   : > { %v773_v40 = vpop.permute.xlu1 %772  ;;  %v771_v56 = vpop.permute.xlu0 %770 }
 0x11a   : > { %v3499_v3 = vsel %vm1560_vm3, %v3281_v20, %v773_v40  ;;  %v3503_v23 = vsel %vm1560_vm3, %v3284_v25, %v771_v56  ;;  %v4318_v25 = vld [vmem:[#allocation16_spill] sm:$0xff]  ;;  %v4326_v56 = vld [vmem:[#allocation19_spill] sm:$0xff] }
 0x11b   : > { %1400 = vrot.lane.b32.xlu1 %v4317_v18, %s2732_s30  ;;  %1050 = vrot.lane.b32.xlu0 %v4315_v53, %s2729_s6 }
 0x11d   : > { %v777_v55 = vpop.permute.xlu1 %776  ;;  %v775_v35 = vpop.permute.xlu0 %774 }
 0x11e   : > { %v3511_v47 = vsel %vm1560_vm3, %v3297_v27, %v777_v55  ;;  %v3515_v20 = vsel %vm1560_vm3, %v3300_v16, %v775_v35 }
 0x11f   : > { %1020 = vrot.lane.b32.xlu1 %v4317_v18, %s2729_s6  ;;  %1432 = vrot.lane.b32.xlu0 %v4318_v25, %s2732_s30  ;;  %v4327_v18 = vld [vmem:[#allocation13_spill] sm:$0xff] }
 0x121   : > { %v781_v61 = vpop.permute.xlu1 %780  ;;  %v779_v34 = vpop.permute.xlu0 %778 }
 0x122   : > { %v3523_v51 = vsel %vm1560_vm3, %v3313_v52, %v781_v61  ;;  %v3527_v27 = vsel %vm1560_vm3, %v3316_v22, %v779_v34  ;;  %v4328_v34 = vld [vmem:[#allocation12_spill] sm:$0xff] }
 0x123   : > { %4319 = vst [vmem:[#allocation36_spill] sm:$0xff] %v3523_v51  ;;  %1146 = vrot.lane.b32.xlu1 %v3096_v45, %s2730_s7  ;;  %1052 = vrot.lane.b32.xlu0 %v4318_v25, %s2729_s6  ;;  %v4346_v51 = vld [vmem:[#allocation42_spill] sm:$0xff] }
 0x125   : > { %v785_v16 = vpop.permute.xlu1 %784  ;;  %v783_v17 = vpop.permute.xlu0 %782 }
 0x126   : > { %v3535_v53 = vsel %vm1560_vm3, %v3324_v24, %v785_v16  ;;  %v3539_v52 = vsel %vm1560_vm3, %v3328_v43, %v783_v17 }
 0x127   : > { %4320 = vst [vmem:[#allocation37_spill] sm:$0xff] %v3535_v53  ;;  %4321 = vst [vmem:[#allocation43_spill] sm:$0xff] %v3539_v52  ;;  %1148 = vrot.lane.b32.xlu1 %v3093_v44, %s2730_s7  ;;  %1178 = vrot.lane.b32.xlu0 %v3200_v57, %s2730_s7  ;;  %v4324_v57 = vld [vmem:[#allocation8_spill] sm:$0xff] }
 0x129   : > { %v789_v45 = vpop.permute.xlu1 %788  ;;  %v787_v22 = vpop.permute.xlu0 %786 }
 0x12a   : > { %v3547_v10 = vsel %vm1560_vm3, %v3336_v54, %v789_v45  ;;  %v3551_v24 = vsel %vm1560_vm3, %v3340_v62, %v787_v22 }
 0x12b   : > { %4322 = vst [vmem:[#allocation38_spill] sm:$0xff] %v3547_v10  ;;  %4323 = vst [vmem:[#allocation44_spill] sm:$0xff] %v3551_v24  ;;  %1274 = vrot.lane.b32.xlu1 %v2840_v7, %s2731_s17  ;;  %1180 = vrot.lane.b32.xlu0 %v3197_v41, %s2730_s7 }
 0x12d   : > { %v3557_v44 = vpop.permute.xlu1 %792  ;;  %v3559_v43 = vpop.permute.xlu0 %790 }
 0x12f   : > { %926 = vrot.lane.b32.xlu1 %v4324_v57, %s2728_s5  ;;  %1306 = vrot.lane.b32.xlu0 %v4324_v57, %s2731_s17 }
 0x131   : > { %v3565_v54 = vpop.permute.xlu1 %796  ;;  %v3567_v62 = vpop.permute.xlu0 %794 }
 0x133   : > { %1308 = vrot.lane.b32.xlu1 %v4325_v12, %s2731_s17  ;;  %1276 = vrot.lane.b32.xlu0 %v2837_v6, %s2731_s17 }
 0x135   : > { %v801_v7 = vpop.permute.xlu1 %800  ;;  %v799_v41 = vpop.permute.xlu0 %798 }
 0x136   : > { %v3575_v13 = vsel %vm1560_vm3, %v3369_v49, %v801_v7  ;;  %v3579_v40 = vsel %vm1560_vm3, %v3372_v26, %v799_v41 }
 0x137   : > { %1434 = vrot.lane.b32.xlu1 %v4326_v56, %s2732_s30  ;;  %1402 = vrot.lane.b32.xlu0 %v4327_v18, %s2732_s30 }
 0x139   : > { %v805_v55 = vpop.permute.xlu1 %804  ;;  %v803_v35 = vpop.permute.xlu0 %802 }
 0x13a   : > { %v3587_v6 = vsel %vm1560_vm3, %v3385_v0, %v805_v55  ;;  %v3591_v49 = vsel %vm1560_vm3, %v3388_v2, %v803_v35 }
 0x13b   : > { %1022 = vrot.lane.b32.xlu1 %v4327_v18, %s2729_s6  ;;  %928 = vrot.lane.b32.xlu0 %v4325_v12, %s2728_s5 }
 0x13d   : > { %v809_v26 = vpop.permute.xlu1 %808  ;;  %v807_v25 = vpop.permute.xlu0 %806 }
 0x13e   : > { %v3599_v61 = vsel %vm1560_vm3, %v3401_v30, %v809_v26  ;;  %v3603_v0 = vsel %vm1560_vm3, %v3404_v31, %v807_v25  ;;  %v4331_v31 = vld [vmem:[#allocation18_spill] sm:$0xff]  ;;  %v4337_v26 = vld [vmem:[#allocation21_spill] sm:$0xff]  ;;  %v4338_v25 = vld [vmem:[#allocation15_spill] sm:$0xff] }
 0x13f   : > { %1404 = vrot.lane.b32.xlu1 %v4328_v34, %s2732_s30  ;;  %1054 = vrot.lane.b32.xlu0 %v4326_v56, %s2729_s6  ;;  %v4336_v56 = vld [vmem:[#allocation9_spill] sm:$0xff] }
 0x141   : > { %v813_v2 = vpop.permute.xlu1 %812  ;;  %v811_v16 = vpop.permute.xlu0 %810 }
 0x142   : > { %v3611_v17 = vsel %vm1560_vm3, %v3417_v42, %v813_v2  ;;  %v3615_v30 = vsel %vm1560_vm3, %v3420_v21, %v811_v16 }
 0x143   : > { %4329 = vst [vmem:[#allocation39_spill] sm:$0xff] %v3611_v17  ;;  %4330 = vst [vmem:[#allocation40_spill] sm:$0xff] %v3615_v30  ;;  %1024 = vrot.lane.b32.xlu1 %v4328_v34, %s2729_s6  ;;  %1436 = vrot.lane.b32.xlu0 %v4331_v31, %s2732_s30 }
 0x145   : > { %v817_v45 = vpop.permute.xlu1 %816  ;;  %v815_v22 = vpop.permute.xlu0 %814 }
 0x146   : > { %v3623_v57 = vsel %vm1560_vm3, %v3439_v15, %v817_v45  ;;  %v3627_v42 = vsel %vm1560_vm3, %v3442_v19, %v815_v22  ;;  %v4340_v45 = vld [vmem:[#allocation14_spill] sm:$0xff] }
 0x147   : > { %4332 = vst [vmem:[#allocation6_spill] sm:$0xff] %v3623_v57  ;;  %4333 = vst [vmem:[#allocation5_spill] sm:$0xff] %v3627_v42  ;;  %1150 = vrot.lane.b32.xlu1 %v3108_v59, %s2730_s7  ;;  %1056 = vrot.lane.b32.xlu0 %v4331_v31, %s2729_s6  ;;  %v2411_v59 = vld [vmem:[%s2810_s28 + $0x61] sm:$0xff]  ;;  %v2350_v22 = vld [vmem:[%s2810_s28 + $0x6a] sm:$0xff] }
 0x148   : > { %v4343_v42 = vld [vmem:[#allocation23_spill] sm:$0xff] }
 0x149   : > { %v821_v21 = vpop.permute.xlu1 %820  ;;  %v819_v12 = vpop.permute.xlu0 %818 }
 0x14a   : > { %v3635_v7 = vsel %vm1560_vm3, %v3453_v46, %v821_v21  ;;  %v3639_v15 = vsel %vm1560_vm3, %v3457_v5, %v819_v12 }
 0x14b   : > { %4334 = vst [vmem:[#allocation17_spill] sm:$0xff] %v3635_v7  ;;  %4335 = vst [vmem:[#allocation11_spill] sm:$0xff] %v3639_v15  ;;  %1152 = vrot.lane.b32.xlu1 %v3105_v58, %s2730_s7  ;;  %1182 = vrot.lane.b32.xlu0 %v3214_v39, %s2730_s7  ;;  %v2428_v39 = vld [vmem:[%s2810_s28 + $0x129] sm:$0xff]  ;;  %v2461_v15 = vld [vmem:[%s2810_s28 + $0x13a] sm:$0xff] }
 0x14c   : > { %v2412_v58 = vld [vmem:[%s2810_s28 + $0x69] sm:$0xff] }
 0x14d   : > { %v3646_v19 = vpop.permute.xlu1 %888  ;;  %v3648_v41 = vpop.permute.xlu0 %886 }
 0x14f   : > { %1278 = vrot.lane.b32.xlu1 %v2411_v59, %s2731_s17  ;;  %1184 = vrot.lane.b32.xlu0 %v3211_v38, %s2730_s7  ;;  %v4342_v59 = vld [vmem:[#allocation20_spill] sm:$0xff] }
 0x151   : > { %v3653_v46 = vpop.permute.xlu1 %892  ;;  %v3655_v5 = vpop.permute.xlu0 %890 }
 0x153   : > { %930 = vrot.lane.b32.xlu1 %v4336_v56, %s2728_s5  ;;  %1310 = vrot.lane.b32.xlu0 %v4336_v56, %s2731_s17 }
 0x155   : > { %v3663_v18 = vpop.permute.xlu1 %896  ;;  %v3665_v55 = vpop.permute.xlu0 %894 }
 0x157   : > { %1312 = vrot.lane.b32.xlu1 %v2428_v39, %s2731_s17  ;;  %1280 = vrot.lane.b32.xlu0 %v2412_v58, %s2731_s17 }
 0x159   : > { %v3669_v38 = vpop.permute.xlu1 %900  ;;  %v3671_v35 = vpop.permute.xlu0 %898 }
 0x15b   : > { %1438 = vrot.lane.b32.xlu1 %v4337_v26, %s2732_s30  ;;  %1406 = vrot.lane.b32.xlu0 %v4338_v25, %s2732_s30 }
 0x15d   : > { %v3677_v34 = vpop.permute.xlu1 %904  ;;  %v3679_v2 = vpop.permute.xlu0 %902 }
 0x15f   : > { %1026 = vrot.lane.b32.xlu1 %v4338_v25, %s2729_s6  ;;  %932 = vrot.lane.b32.xlu0 %v2428_v39, %s2728_s5  ;;  %v2413_v25 = vld [vmem:[%s2810_s28 + $0x79] sm:$0xff] }
 0x161   : > { %v3684_v16 = vpop.permute.xlu1 %908  ;;  %v3686_v31 = vpop.permute.xlu0 %906 }
 0x162   : > { %4339 = vst [vmem:[#allocation10_spill] sm:$0xff] %v3684_v16 }
 0x163   : > { %1408 = vrot.lane.b32.xlu1 %v4340_v45, %s2732_s30  ;;  %1058 = vrot.lane.b32.xlu0 %v4337_v26, %s2729_s6 }
 0x165   : > { %v919_v21 = vpop.permute.xlu1 %918  ;;  %v3693_v12 = vpop.permute.xlu0 %910 }
 0x166   : > { %4341 = vst [vmem:[#allocation16_spill] sm:$0xff] %v3693_v12  ;;  %v4344_v12 = vld [vmem:[#allocation29_spill] sm:$0xff] }
 0x167   : > { %1028 = vrot.lane.b32.xlu1 %v2350_v22, %s2729_s6  ;;  %1440 = vrot.lane.b32.xlu0 %v4342_v59, %s2732_s30 }
 0x169   : > { %v1015_v56 = vpop.permute.xlu1 %1014  ;;  %v3698_v39 = vpop.permute.xlu0 %920 }
 0x16b   : > { %1154 = vrot.lane.b32.xlu1 %v3126_v60, %s2730_s7  ;;  %1060 = vrot.lane.b32.xlu0 %v4342_v59, %s2729_s6  ;;  %v2335_v60 = vld [vmem:[%s2810_s28 + $0x139] sm:$0xff] }
 0x16d   : > { %v3704_v58 = vpop.permute.xlu1 %1016  ;;  %v1047_v26 = vpop.permute.xlu0 %1046 }
 0x16f   : > { %1156 = vrot.lane.b32.xlu1 %v3123_v28, %s2730_s7  ;;  %1186 = vrot.lane.b32.xlu0 %v3226_v37, %s2730_s7  ;;  %v2430_v37 = vld [vmem:[%s2810_s28 + $0x141] sm:$0xff] }
 0x170   : > { %v2414_v28 = vld [vmem:[%s2810_s28 + $0x81] sm:$0xff] }
 0x171   : > { %v1143_v45 = vpop.permute.xlu1 %1142  ;;  %v3711_v22 = vpop.permute.xlu0 %1048 }
 0x173   : > { %1282 = vrot.lane.b32.xlu1 %v2413_v25, %s2731_s17  ;;  %1188 = vrot.lane.b32.xlu0 %v3223_v36, %s2730_s7  ;;  %v180_v25 = vld [vmem:[%s2810_s28] sm:$0xff] }
 0x174   : > { %v2445_v36 = vld [vmem:[%s2810_s28 + $0x7a] sm:$0xff]  ;;  %v1495_v52 = vsel %vm1494_vm0, %v180_v25, %v4343_v42 }
 0x175   : > { %v3717_v59 = vpop.permute.xlu1 %1144  ;;  %v1175_v10 = vpop.permute.xlu0 %1174 }
 0x177   : > { %934 = vrot.lane.b32.xlu1 %v2335_v60, %s2728_s5  ;;  %1314 = vrot.lane.b32.xlu0 %v2335_v60, %s2731_s17  ;;  %v4345_v60 = vld [vmem:[#allocation33_spill] sm:$0xff] }
 0x178   : > { %v1511_v17 = vsel %vm1494_vm0, %v4345_v60, %v4344_v12 }
 0x179   : > { %v1271_v7 = vpop.permute.xlu1 %1270  ;;  %v3723_v24 = vpop.permute.xlu0 %1176  ;;  %v1544_v16 = vsel %vm1527_vm1, %v1511_v17, %v3348_v63 }
 0x17a   : > { %v1577_v12 = vsel %vm1560_vm3, %v1544_v16, %v3559_v43  ;;  %v2446_v16 = vld [vmem:[%s2810_s28 + $0x82] sm:$0xff] }
 0x17b   : > { %1316 = vrot.lane.b32.xlu1 %v2430_v37, %s2731_s17  ;;  %1284 = vrot.lane.b32.xlu0 %v2414_v28, %s2731_s17  ;;  %v1528_v28 = vsel %vm1527_vm1, %v1495_v52, %v4346_v51  ;;  %v1610_v51 = vsel %vm1593_vm4, %v1577_v12, %v919_v21 }
 0x17c   : > { %v1561_v42 = vsel %vm1560_vm3, %v1528_v28, %v3471_v1  ;;  %v1643_v63 = vsel %vm1626_vm5, %v1610_v51, %v1047_v26  ;;  %v181_v1 = vld [vmem:[%s2810_s28 + $0x8] sm:$0xff] }
 0x17d   : > { %v3730_v53 = vpop.permute.xlu1 %922  ;;  %v1303_v57 = vpop.permute.xlu0 %1302  ;;  %v1594_v30 = vsel %vm1593_vm4, %v1561_v42, %v3648_v41  ;;  %v1676_v17 = vsel %vm1659_vm6, %v1643_v63, %v1175_v10  ;;  %v4348_v10 = vld [vmem:[#allocation41_spill] sm:$0xff]  ;;  %v4350_v63 = vld [vmem:[#allocation32_spill] sm:$0xff] }
 0x17e   : > { %v1627_v52 = vsel %vm1626_vm5, %v1594_v30, %v1015_v56  ;;  %v1709_v21 = vsel %vm1692_vm7, %v1676_v17, %v1303_v57  ;;  %v2462_v57 = vld [vmem:[%s2810_s28 + $0x142] sm:$0xff]  ;;  %v2383_v17 = vld [vmem:[%s2810_s28 + $0x90] sm:$0xff] }
 0x17f   : > { %1442 = vrot.lane.b32.xlu1 %v2461_v15, %s2732_s30  ;;  %1410 = vrot.lane.b32.xlu0 %v2445_v36, %s2732_s30  ;;  %v1660_v43 = vsel %vm1659_vm6, %v1627_v52, %v1143_v45  ;;  %v4349_v52 = vld [vmem:[#allocation28_spill] sm:$0xff] }
 0x180   : > { %v1693_v41 = vsel %vm1692_vm7, %v1660_v43, %v1271_v7 }
 0x181   : > { %v1305_v25 = vpop.permute.xlu1 %1304  ;;  %v1273_v60 = vpop.permute.xlu0 %1272 }
 0x183   : > { %1030 = vrot.lane.b32.xlu1 %v2445_v36, %s2729_s6  ;;  %936 = vrot.lane.b32.xlu0 %v2430_v37, %s2728_s5  ;;  %v4347_v37 = vld [vmem:[#allocation25_spill] sm:$0xff] }
 0x184   : > { %v1496_v36 = vsel %vm1494_vm0, %v181_v1, %v4347_v37 }
 0x185   : > { %v1431_v28 = vpop.permute.xlu1 %1430  ;;  %v1399_v30 = vpop.permute.xlu0 %1398  ;;  %v1529_v7 = vsel %vm1527_vm1, %v1496_v36, %v4348_v10  ;;  %v2416_v10 = vld [vmem:[%s2810_s28 + $0x99] sm:$0xff] }
 0x186   : > { %v1726_v56 = vsel %vm1725_vm8, %v1693_v41, %v1399_v30  ;;  %v1742_v26 = vsel %vm1725_vm8, %v1709_v21, %v1431_v28  ;;  %v1562_v45 = vsel %vm1560_vm3, %v1529_v7, %v3469_v29 }
 0x187   : > { %1412 = vrot.lane.b32.xlu1 %v2446_v16, %s2732_s30  ;;  %1062 = vrot.lane.b32.xlu0 %v2461_v15, %s2729_s6  ;;  %v1595_v51 = vsel %vm1593_vm4, %v1562_v45, %v3646_v19  ;;  %v1512_v15 = vsel %vm1494_vm0, %v4350_v63, %v4349_v52  ;;  %v2463_v45 = vld [vmem:[%s2810_s28 + $0x152] sm:$0xff]  ;;  %v4351_v63 = vld [vmem:[#allocation22_spill] sm:$0xff] }
 0x188   : > { %2557 = vmatprep.mubr.msk.f32.mxu0 %vm1763_vm9, %v1726_v56  ;;  %2581 = vmatprep.mubr.msk.f32.mxu1 %vm1763_vm9, %v1742_v26  ;;  %v1628_v1 = vsel %vm1626_vm5, %v1595_v51, %v3704_v58  ;;  %v1545_v29 = vsel %vm1527_vm1, %v1512_v15, %v3346_v8  ;;  %v2447_v51 = vld [vmem:[%s2810_s28 + $0x92] sm:$0xff]  ;;  %v4352_v15 = vld [vmem:[#allocation26_spill] sm:$0xff] }
 0x189   : > { %v1019_v42 = vpop.permute.xlu1 %1018  ;;  %v3773_v12 = vpop.permute.xlu0 %924  ;;  %v1661_v43 = vsel %vm1659_vm6, %v1628_v1, %v3717_v59  ;;  %v1578_v19 = vsel %vm1560_vm3, %v1545_v29, %v3557_v44  ;;  %v2384_v59 = vld [vmem:[%s2810_s28 + $0x98] sm:$0xff]  ;;  %v1497_v1 = vsel %vm1494_vm0, %v4352_v15, %v4351_v63  ;;  %v4353_v29 = vld [vmem:[#allocation31_spill] sm:$0xff] }
 0x18a   : > { %v1694_v41 = vsel %vm1692_vm7, %v1661_v43, %v1273_v60  ;;  %v1611_v58 = vsel %vm1593_vm4, %v1578_v19, %v3698_v39  ;;  %v4354_v43 = vld [vmem:[#allocation35_spill] sm:$0xff]  ;;  %v4355_v19 = vld [vmem:[#allocation46_spill] sm:$0xff] }
 0x18b   : > { %1032 = vrot.lane.b32.xlu1 %v2446_v16, %s2729_s6  ;;  %1444 = vrot.lane.b32.xlu0 %v2462_v57, %s2732_s30  ;;  %v1644_v8 = vsel %vm1626_vm5, %v1611_v58, %v3711_v22 }
 0x18c   : > { %v1677_v44 = vsel %vm1659_vm6, %v1644_v8, %v3723_v24  ;;  %v2415_v24 = vld [vmem:[%s2810_s28 + $0x91] sm:$0xff] }
 0x18d   : > { %v1401_v21 = vpop.permute.xlu1 %1400  ;;  %v1051_v28 = vpop.permute.xlu0 %1050  ;;  %v1710_v60 = vsel %vm1692_vm7, %v1677_v44, %v1305_v25  ;;  %v2337_v25 = vld [vmem:[%s2810_s28 + $0x151] sm:$0xff] }
 0x18e   : > { %v1727_v16 = vsel %vm1725_vm8, %v1694_v41, %v1401_v21  ;;  %v1530_v41 = vsel %vm1527_vm1, %v1497_v1, %v4355_v19 }
 0x18f   : > { %1158 = vrot.lane.b32.xlu1 %v2383_v17, %s2730_s7  ;;  %1064 = vrot.lane.b32.xlu0 %v2462_v57, %s2729_s6  ;;  %v1513_v17 = vsel %vm1494_vm0, %v4354_v43, %v4353_v29  ;;  %v1563_v58 = vsel %vm1560_vm3, %v1530_v41, %v3479_v33  ;;  %v4359_v29 = vld [vmem:[#allocation30_spill] sm:$0xff] }
 0x190   : > { %2558 = vmatmul.mubr.msk.f32.vlgmr.msra.gmra.mxu0 %vm1763_vm9, %v1727_v16  ;;  %v1546_v21 = vsel %vm1527_vm1, %v1513_v17, %v3356_v48  ;;  %v4360_v43 = vld [vmem:[#allocation34_spill] sm:$0xff] }
 0x191   : > { %v3804_v30 = vpop.permute.xlu1 %1020  ;;  %v1433_v39 = vpop.permute.xlu0 %1432  ;;  %v1579_v16 = vsel %vm1560_vm3, %v1546_v21, %v3567_v62  ;;  %v2448_v62 = vld [vmem:[%s2810_s28 + $0x9a] sm:$0xff]  ;;  %v2385_v41 = vld [vmem:[%s2810_s28 + $0xa8] sm:$0xff] }
 0x192   : > { %v1743_v22 = vsel %vm1725_vm8, %v1710_v60, %v1433_v39  ;;  %v1612_v60 = vsel %vm1593_vm4, %v1579_v16, %v3730_v53 }
 0x193   : > { %1160 = vrot.lane.b32.xlu1 %v2384_v59, %s2730_s7  ;;  %1190 = vrot.lane.b32.xlu0 %v4310_v11, %s2730_s7  ;;  %v2432_v11 = vld [vmem:[%s2810_s28 + $0x159] sm:$0xff]  ;;  %v1596_v59 = vsel %vm1593_vm4, %v1563_v58, %v3655_v5 }
 0x194   : > { %2582 = vmatmul.mubr.msk.f32.vlgmr.msra.gmra.mxu1 %vm1763_vm9, %v1743_v22  ;;  %v1629_v39 = vsel %vm1626_vm5, %v1596_v59, %v1019_v42  ;;  %v1645_v22 = vsel %vm1626_vm5, %v1612_v60, %v1051_v28 }
 0x195   : > { %v1147_v56 = vpop.permute.xlu1 %1146  ;;  %v3812_v26 = vpop.permute.xlu0 %1052 }
 0x196   : > { %v1662_v48 = vsel %vm1659_vm6, %v1629_v39, %v1147_v56  ;;  %v4358_v56 = vld [vmem:[#allocation45_spill] sm:$0xff] }
 0x197   : > { %1286 = vrot.lane.b32.xlu1 %v2415_v24, %s2731_s17  ;;  %1192 = vrot.lane.b32.xlu0 %v4308_v14, %s2730_s7 }
 0x199   : > { %v1149_v37 = vpop.permute.xlu1 %1148  ;;  %v1179_v36 = vpop.permute.xlu0 %1178 }
 0x19a   : > { %v1678_v33 = vsel %vm1659_vm6, %v1645_v22, %v1179_v36 }
 0x19b   : > { %938 = vrot.lane.b32.xlu1 %v2337_v25, %s2728_s5  ;;  %1318 = vrot.lane.b32.xlu0 %v2337_v25, %s2731_s17 }
 0x19d   : > { %v1275_v7 = vpop.permute.xlu1 %1274  ;;  %v1181_v57 = vpop.permute.xlu0 %1180 }
 0x19e   : > { %v1695_v24 = vsel %vm1692_vm7, %v1662_v48, %v1275_v7  ;;  %v2464_v7 = vld [vmem:[%s2810_s28 + $0x15a] sm:$0xff] }
 0x19f   : > { %1320 = vrot.lane.b32.xlu1 %v2432_v11, %s2731_s17  ;;  %1288 = vrot.lane.b32.xlu0 %v2416_v10, %s2731_s17  ;;  %v4356_v10 = vld [vmem:[#allocation24_spill] sm:$0xff] }
 0x1a1   : > { %v3826_v52 = vpop.permute.xlu1 %926  ;;  %v1307_v14 = vpop.permute.xlu0 %1306 }
 0x1a2   : > { %v1711_v5 = vsel %vm1692_vm7, %v1678_v33, %v1307_v14 }
 0x1a3   : > { %1446 = vrot.lane.b32.xlu1 %v2463_v45, %s2732_s30  ;;  %1414 = vrot.lane.b32.xlu0 %v2447_v51, %s2732_s30 }
 0x1a5   : > { %v1309_v8 = vpop.permute.xlu1 %1308  ;;  %v1277_v44 = vpop.permute.xlu0 %1276 }
 0x1a7   : > { %1034 = vrot.lane.b32.xlu1 %v2447_v51, %s2729_s6  ;;  %940 = vrot.lane.b32.xlu0 %v2432_v11, %s2728_s5  ;;  %v4357_v51 = vld [vmem:[#allocation27_spill] sm:$0xff] }
 0x1a8   : > { %v1498_v11 = vsel %vm1494_vm0, %v4357_v51, %v4356_v10  ;;  %v2449_v10 = vld [vmem:[%s2810_s28 + $0xaa] sm:$0xff] }
 0x1a9   : > { %v1435_v25 = vpop.permute.xlu1 %1434  ;;  %v1403_v53 = vpop.permute.xlu0 %1402  ;;  %v1531_v36 = vsel %vm1527_vm1, %v1498_v11, %v4358_v56 }
 0x1aa   : > { %v1744_v42 = vsel %vm1725_vm8, %v1711_v5, %v1435_v25  ;;  %v1728_v28 = vsel %vm1725_vm8, %v1695_v24, %v1403_v53  ;;  %v1564_v14 = vsel %vm1560_vm3, %v1531_v36, %v3477_v50  ;;  %v2434_v5 = vld [vmem:[%s2810_s28 + $0x171] sm:$0xff] }
 0x1ab   : > { %1416 = vrot.lane.b32.xlu1 %v2448_v62, %s2732_s30  ;;  %1066 = vrot.lane.b32.xlu0 %v2463_v45, %s2729_s6  ;;  %v1597_v1 = vsel %vm1593_vm4, %v1564_v14, %v3653_v46  ;;  %v1514_v45 = vsel %vm1494_vm0, %v4360_v43, %v4359_v29  ;;  %v2418_v25 = vld [vmem:[%s2810_s28 + $0xb1] sm:$0xff]  ;;  %v1614_v14 = vsel %vm1593_vm4, %v3579_v40, %v3826_v52 }
 0x1ac   : > { %2560 = vmatprep.mubr.msk.f32.mxu0 %vm1763_vm9, %v1728_v28  ;;  %2584 = vmatprep.mubr.msk.f32.mxu1 %vm1763_vm9, %v1744_v42  ;;  %v1630_v17 = vsel %vm1626_vm5, %v1597_v1, %v3804_v30  ;;  %v1547_v50 = vsel %vm1527_vm1, %v1514_v45, %v3354_v9  ;;  %v2465_v28 = vld [vmem:[%s2810_s28 + $0x16a] sm:$0xff] }
 0x1ad   : > { %v1023_v63 = vpop.permute.xlu1 %1022  ;;  %v3871_v15 = vpop.permute.xlu0 %928  ;;  %v1663_v19 = vsel %vm1659_vm6, %v1630_v17, %v1149_v37  ;;  %v1580_v46 = vsel %vm1560_vm3, %v1547_v50, %v3565_v54  ;;  %v2386_v37 = vld [vmem:[%s2810_s28 + $0xb0] sm:$0xff] }
 0x1ae   : > { %v1696_v21 = vsel %vm1692_vm7, %v1663_v19, %v1277_v44  ;;  %v1613_v30 = vsel %vm1593_vm4, %v1580_v46, %v3773_v12  ;;  %v2401_v44 = vld [vmem:[%s2810_s28 + $0x168] sm:$0xff]  ;;  %v2466_v50 = vld [vmem:[%s2810_s28 + $0x172] sm:$0xff] }
 0x1af   : > { %1036 = vrot.lane.b32.xlu1 %v2448_v62, %s2729_s6  ;;  %1448 = vrot.lane.b32.xlu0 %v2464_v7, %s2732_s30  ;;  %v1646_v9 = vsel %vm1626_vm5, %v1613_v30, %v3812_v26  ;;  %v2417_v26 = vld [vmem:[%s2810_s28 + $0xa9] sm:$0xff]  ;;  %v2450_v19 = vld [vmem:[%s2810_s28 + $0xb2] sm:$0xff] }
 0x1b0   : > { %v1679_v54 = vsel %vm1659_vm6, %v1646_v9, %v1181_v57  ;;  %v2402_v57 = vld [vmem:[%s2810_s28 + $0x170] sm:$0xff] }
 0x1b1   : > { %v1405_v58 = vpop.permute.xlu1 %1404  ;;  %v1055_v16 = vpop.permute.xlu0 %1054  ;;  %v1712_v12 = vsel %vm1692_vm7, %v1679_v54, %v1309_v8  ;;  %v2339_v8 = vld [vmem:[%s2810_s28 + $0x169] sm:$0xff]  ;;  %v1615_v54 = vsel %vm1593_vm4, %v3575_v13, %v3871_v15 }
 0x1b2   : > { %v1729_v59 = vsel %vm1725_vm8, %v1696_v21, %v1405_v58  ;;  %v1647_v29 = vsel %vm1626_vm5, %v1614_v14, %v1055_v16  ;;  %v1599_v21 = vsel %vm1593_vm4, %v3487_v32, %v3663_v18  ;;  %v1600_v14 = vsel %vm1593_vm4, %v3503_v23, %v3671_v35 }
 0x1b3   : > { %1162 = vrot.lane.b32.xlu1 %v2385_v41, %s2730_s7  ;;  %1068 = vrot.lane.b32.xlu0 %v2464_v7, %s2729_s6  ;;  %v1598_v7 = vsel %vm1593_vm4, %v3491_v4, %v3665_v55 }
 0x1b4   : > { %2561 = vmatmul.mubr.msk.f32.gmra.mxu0 %vm1763_vm9, %v1729_v59  ;;  %v1631_v1 = vsel %vm1626_vm5, %v1598_v7, %v1023_v63 }
 0x1b5   : > { %v1025_v60 = vpop.permute.xlu1 %1024  ;;  %v1437_v39 = vpop.permute.xlu0 %1436 }
 0x1b6   : > { %v1745_v22 = vsel %vm1725_vm8, %v1712_v12, %v1437_v39  ;;  %v1632_v58 = vsel %vm1626_vm5, %v1599_v21, %v1025_v60  ;;  %v2387_v12 = vld [vmem:[%s2810_s28 + $0xc0] sm:$0xff]  ;;  %v2452_v21 = vld [vmem:[%s2810_s28 + $0xca] sm:$0xff] }
 0x1b7   : > { %1164 = vrot.lane.b32.xlu1 %v2386_v37, %s2730_s7  ;;  %1194 = vrot.lane.b32.xlu0 %v2401_v44, %s2730_s7  ;;  %v2403_v44 = vld [vmem:[%s2810_s28 + $0x180] sm:$0xff] }
 0x1b8   : > { %2585 = vmatmul.mubr.msk.f32.gmra.mxu1 %vm1763_vm9, %v1745_v22  ;;  %v2404_v22 = vld [vmem:[%s2810_s28 + $0x188] sm:$0xff] }
 0x1b9   : > { %v1151_v48 = vpop.permute.xlu1 %1150  ;;  %v1057_v33 = vpop.permute.xlu0 %1056 }
 0x1ba   : > { %v1664_v43 = vsel %vm1659_vm6, %v1631_v1, %v1151_v48  ;;  %v1648_v18 = vsel %vm1626_vm5, %v1615_v54, %v1057_v33  ;;  %v2435_v33 = vld [vmem:[%s2810_s28 + $0x181] sm:$0xff] }
 0x1bb   : > { %1290 = vrot.lane.b32.xlu1 %v2417_v26, %s2731_s17  ;;  %1196 = vrot.lane.b32.xlu0 %v2402_v57, %s2730_s7  ;;  %v2388_v26 = vld [vmem:[%s2810_s28 + $0xc8] sm:$0xff] }
 0x1bd   : > { %v1153_v62 = vpop.permute.xlu1 %1152  ;;  %v1183_v24 = vpop.permute.xlu0 %1182 }
 0x1be   : > { %v1680_v45 = vsel %vm1659_vm6, %v1647_v29, %v1183_v24  ;;  %v1665_v16 = vsel %vm1659_vm6, %v1632_v58, %v1153_v62 }
 0x1bf   : > { %942 = vrot.lane.b32.xlu1 %v2339_v8, %s2728_s5  ;;  %1322 = vrot.lane.b32.xlu0 %v2339_v8, %s2731_s17  ;;  %v2419_v8 = vld [vmem:[%s2810_s28 + $0xc1] sm:$0xff] }
 0x1c1   : > { %v1279_v53 = vpop.permute.xlu1 %1278  ;;  %v1185_v42 = vpop.permute.xlu0 %1184 }
 0x1c2   : > { %v1697_v4 = vsel %vm1692_vm7, %v1664_v43, %v1279_v53  ;;  %v1681_v37 = vsel %vm1659_vm6, %v1648_v18, %v1185_v42  ;;  %v2436_v53 = vld [vmem:[%s2810_s28 + $0x189] sm:$0xff] }
 0x1c3   : > { %1324 = vrot.lane.b32.xlu1 %v2434_v5, %s2731_s17  ;;  %1292 = vrot.lane.b32.xlu0 %v2418_v25, %s2731_s17  ;;  %v2420_v42 = vld [vmem:[%s2810_s28 + $0xc9] sm:$0xff] }
 0x1c5   : > { %v3918_v51 = vpop.permute.xlu1 %930  ;;  %v1311_v11 = vpop.permute.xlu0 %1310 }
 0x1c6   : > { %v1713_v55 = vsel %vm1692_vm7, %v1680_v45, %v1311_v11  ;;  %v2467_v11 = vld [vmem:[%s2810_s28 + $0x182] sm:$0xff]  ;;  %v1616_v1 = vsel %vm1593_vm4, %v3591_v49, %v3918_v51 }
 0x1c7   : > { %1450 = vrot.lane.b32.xlu1 %v2465_v28, %s2732_s30  ;;  %1418 = vrot.lane.b32.xlu0 %v2449_v10, %s2732_s30 }
 0x1c9   : > { %v1313_v56 = vpop.permute.xlu1 %1312  ;;  %v1281_v36 = vpop.permute.xlu0 %1280 }
 0x1ca   : > { %v1698_v30 = vsel %vm1692_vm7, %v1665_v16, %v1281_v36  ;;  %v1714_v13 = vsel %vm1692_vm7, %v1681_v37, %v1313_v56  ;;  %v2451_v56 = vld [vmem:[%s2810_s28 + $0xc2] sm:$0xff]  ;;  %v2389_v37 = vld [vmem:[%s2810_s28 + $0xd8] sm:$0xff] }
 0x1cb   : > { %944 = vrot.lane.b32.xlu1 %v2434_v5, %s2728_s5  ;;  %912 = vrot.lane.b32.xlu0 %v2418_v25, %s2728_s5 }
 0x1cd   : > { %v1439_v17 = vpop.permute.xlu1 %1438  ;;  %v1407_v40 = vpop.permute.xlu0 %1406 }
 0x1ce   : > { %v1746_v52 = vsel %vm1725_vm8, %v1713_v55, %v1439_v17  ;;  %v1730_v63 = vsel %vm1725_vm8, %v1697_v4, %v1407_v40 }
 0x1cf   : > { %1070 = vrot.lane.b32.xlu1 %v2465_v28, %s2729_s6  ;;  %1038 = vrot.lane.b32.xlu0 %v2449_v10, %s2729_s6 }
 0x1d0   : > { %2563 = vmatprep.mubr.msk.f32.mxu0 %vm1763_vm9, %v1730_v63  ;;  %2587 = vmatprep.mubr.msk.f32.mxu1 %vm1763_vm9, %v1746_v52  ;;  %v1601_v63 = vsel %vm1593_vm4, %v3499_v3, %v3669_v38 }
 0x1d1   : > { %v1027_v41 = vpop.permute.xlu1 %1026  ;;  %v3944_v46 = vpop.permute.xlu0 %932 }
 0x1d2   : > { %v1633_v29 = vsel %vm1626_vm5, %v1600_v14, %v1027_v41  ;;  %v2468_v41 = vld [vmem:[%s2810_s28 + $0x18a] sm:$0xff]  ;;  %v1617_v3 = vsel %vm1593_vm4, %v3587_v6, %v3944_v46  ;;  %v2405_v46 = vld [vmem:[%s2810_s28 + $0x198] sm:$0xff] }
 0x1d3   : > { %1452 = vrot.lane.b32.xlu1 %v2466_v50, %s2732_s30  ;;  %1420 = vrot.lane.b32.xlu0 %v2450_v19, %s2732_s30 }
 0x1d5   : > { %v1409_v59 = vpop.permute.xlu1 %1408  ;;  %v1059_v9 = vpop.permute.xlu0 %1058 }
 0x1d6   : > { %v1731_v32 = vsel %vm1725_vm8, %v1698_v30, %v1409_v59  ;;  %v1649_v43 = vsel %vm1626_vm5, %v1616_v1, %v1059_v9  ;;  %v2470_v1 = vld [vmem:[%s2810_s28 + $0x1a2] sm:$0xff] }
 0x1d7   : > { %1072 = vrot.lane.b32.xlu1 %v2466_v50, %s2729_s6  ;;  %1040 = vrot.lane.b32.xlu0 %v2450_v19, %s2729_s6 }
 0x1d8   : > { %2564 = vmatmul.mubr.msk.f32.gmra.mxu0 %vm1763_vm9, %v1731_v32 }
 0x1d9   : > { %v1029_v15 = vpop.permute.xlu1 %1028  ;;  %v1441_v60 = vpop.permute.xlu0 %1440 }
 0x1da   : > { %v1747_v39 = vsel %vm1725_vm8, %v1714_v13, %v1441_v60  ;;  %v1634_v50 = vsel %vm1626_vm5, %v1601_v63, %v1029_v15  ;;  %v2406_v13 = vld [vmem:[%s2810_s28 + $0x1a0] sm:$0xff] }
 0x1db   : > { %1198 = vrot.lane.b32.xlu1 %v2403_v44, %s2730_s7  ;;  %1166 = vrot.lane.b32.xlu0 %v2387_v12, %s2730_s7  ;;  %v2390_v15 = vld [vmem:[%s2810_s28 + $0xe0] sm:$0xff] }
 0x1dc   : > { %2588 = vmatmul.mubr.msk.f32.gmra.mxu1 %vm1763_vm9, %v1747_v39 }
 0x1dd   : > { %v1155_v57 = vpop.permute.xlu1 %1154  ;;  %v1061_v48 = vpop.permute.xlu0 %1060 }
 0x1de   : > { %v1666_v45 = vsel %vm1659_vm6, %v1633_v29, %v1155_v57  ;;  %v1650_v59 = vsel %vm1626_vm5, %v1617_v3, %v1061_v48  ;;  %v2454_v29 = vld [vmem:[%s2810_s28 + $0xe2] sm:$0xff] }
 0x1df   : > { %1200 = vrot.lane.b32.xlu1 %v2404_v22, %s2730_s7  ;;  %1168 = vrot.lane.b32.xlu0 %v2388_v26, %s2730_s7  ;;  %v2437_v22 = vld [vmem:[%s2810_s28 + $0x199] sm:$0xff] }
 0x1e0   : > { %v2421_v26 = vld [vmem:[%s2810_s28 + $0xd9] sm:$0xff] }
 0x1e1   : > { %v1157_v62 = vpop.permute.xlu1 %1156  ;;  %v1187_v24 = vpop.permute.xlu0 %1186 }
 0x1e2   : > { %v1682_v4 = vsel %vm1659_vm6, %v1649_v43, %v1187_v24  ;;  %v1667_v19 = vsel %vm1659_vm6, %v1634_v50, %v1157_v62 }
 0x1e3   : > { %1326 = vrot.lane.b32.xlu1 %v2435_v33, %s2731_s17  ;;  %1294 = vrot.lane.b32.xlu0 %v2419_v8, %s2731_s17 }
 0x1e5   : > { %v1283_v5 = vpop.permute.xlu1 %1282  ;;  %v1189_v25 = vpop.permute.xlu0 %1188 }
 0x1e6   : > { %v1699_v55 = vsel %vm1692_vm7, %v1666_v45, %v1283_v5  ;;  %v1683_v9 = vsel %vm1659_vm6, %v1650_v59, %v1189_v25  ;;  %v2469_v5 = vld [vmem:[%s2810_s28 + $0x19a] sm:$0xff] }
 0x1e7   : > { %946 = vrot.lane.b32.xlu1 %v2435_v33, %s2728_s5  ;;  %914 = vrot.lane.b32.xlu0 %v2419_v8, %s2728_s5  ;;  %v2438_v33 = vld [vmem:[%s2810_s28 + $0x1a1] sm:$0xff] }
 0x1e8   : > { %v2422_v8 = vld [vmem:[%s2810_s28 + $0xe1] sm:$0xff] }
 0x1e9   : > { %v3982_v28 = vpop.permute.xlu1 %934  ;;  %v1315_v10 = vpop.permute.xlu0 %1314  ;;  %v2453_v25 = vld [vmem:[%s2810_s28 + $0xda] sm:$0xff]  ;;  %s162_s28 = sand.u32 1, %s2715_s13  }
 0x1ea   : > { %v1715_v23 = vsel %vm1692_vm7, %v1682_v4, %v1315_v10  ;;  %v1602_v10 = vsel %vm1593_vm4, %v3515_v20, %v3679_v2  ;;  %s2276_s4 = sshll.u32 %s162_s28, 4  ;;  %s2168_s11 = scalar_lea.sflag [#allocation3], %s162_s28 }
 0x1eb   : > { %1328 = vrot.lane.b32.xlu1 %v2436_v53, %s2731_s17  ;;  %1296 = vrot.lane.b32.xlu0 %v2420_v42, %s2731_s17 }
 0x1ed   : > { %v1317_v36 = vpop.permute.xlu1 %1316  ;;  %v1285_v7 = vpop.permute.xlu0 %1284 }
 0x1ee   : > { %v1700_v58 = vsel %vm1692_vm7, %v1667_v19, %v1285_v7  ;;  %v1716_v54 = vsel %vm1692_vm7, %v1683_v9, %v1317_v36 }
 0x1ef   : > { %1454 = vrot.lane.b32.xlu1 %v2467_v11, %s2732_s30  ;;  %1422 = vrot.lane.b32.xlu0 %v2451_v56, %s2732_s30 }
 0x1f1   : > { %v1443_v35 = vpop.permute.xlu1 %1442  ;;  %v1411_v49 = vpop.permute.xlu0 %1410 }
 0x1f2   : > { %v1748_v51 = vsel %vm1725_vm8, %v1715_v23, %v1443_v35  ;;  %v1732_v17 = vsel %vm1725_vm8, %v1699_v55, %v1411_v49  ;;  %v1603_v23 = vsel %vm1593_vm4, %v3511_v47, %v3677_v34 }
 0x1f3   : > { %948 = vrot.lane.b32.xlu1 %v2436_v53, %s2728_s5  ;;  %916 = vrot.lane.b32.xlu0 %v2420_v42, %s2728_s5  ;;  %s164_s5 = scalar_lea.vmem [#allocation2], %s2276_s4 }
 0x1f4   : > { %2566 = vmatprep.mubr.msk.f32.mxu0 %vm1763_vm9, %v1732_v17  ;;  %2590 = vmatprep.mubr.msk.f32.mxu1 %vm1763_vm9, %v1748_v51 }
 0x1f5   : > { %v1031_v40 = vpop.permute.xlu1 %1030  ;;  %v4008_v52 = vpop.permute.xlu0 %936 }
 0x1f6   : > { %v1619_v63 = vsel %vm1593_vm4, %v3599_v61, %v4008_v52 }
 0x1f7   : > { %1074 = vrot.lane.b32.xlu1 %v2467_v11, %s2729_s6  ;;  %1042 = vrot.lane.b32.xlu0 %v2451_v56, %s2729_s6  ;;  %v1618_v11 = vsel %vm1593_vm4, %v3603_v0, %v3982_v28  ;;  %v1635_v56 = vsel %vm1626_vm5, %v1602_v10, %v1031_v40 }
 0x1f9   : > { %v1413_v16 = vpop.permute.xlu1 %1412  ;;  %v1063_v30 = vpop.permute.xlu0 %1062 }
 0x1fa   : > { %v1733_v38 = vsel %vm1725_vm8, %v1700_v58, %v1413_v16  ;;  %v1651_v36 = vsel %vm1626_vm5, %v1618_v11, %v1063_v30 }
 0x1fb   : > { %1456 = vrot.lane.b32.xlu1 %v2468_v41, %s2732_s30  ;;  %1424 = vrot.lane.b32.xlu0 %v2452_v21, %s2732_s30 }
 0x1fc   : > { %2567 = vmatmul.mubr.msk.f32.gmra.mxu0 %vm1763_vm9, %v1733_v38 }
 0x1fd   : > { %v1033_v32 = vpop.permute.xlu1 %1032  ;;  %v1445_v18 = vpop.permute.xlu0 %1444 }
 0x1fe   : > { %v1749_v6 = vsel %vm1725_vm8, %v1716_v54, %v1445_v18  ;;  %v1636_v35 = vsel %vm1626_vm5, %v1603_v23, %v1033_v32  ;;  %v1604_v18 = vsel %vm1593_vm4, %v3527_v27, %v3686_v31 }
 0x1ff   : > { %1076 = vrot.lane.b32.xlu1 %v2468_v41, %s2729_s6  ;;  %1044 = vrot.lane.b32.xlu0 %v2452_v21, %s2729_s6  ;;  %s2509_s6 = sshll.u32 %s2775_s16, 8 }
 0x200   : > { %2591 = vmatmul.mubr.msk.f32.gmra.mxu1 %vm1763_vm9, %v1749_v6  ;;  %v4361_v6 = vld [vmem:[#allocation40_spill] sm:$0xff]  ;;  %s2184_s10 = scalar_lea.hbm %s4217_s2, %s2509_s6 }
 0x201   : > { %v1159_v44 = vpop.permute.xlu1 %1158  ;;  %v1065_v12 = vpop.permute.xlu0 %1064 }
 0x202   : > { %v1668_v7 = vsel %vm1659_vm6, %v1635_v56, %v1159_v44  ;;  %v1652_v19 = vsel %vm1626_vm5, %v1619_v63, %v1065_v12 }
 0x203   : > { %1202 = vrot.lane.b32.xlu1 %v2405_v46, %s2730_s7  ;;  %1170 = vrot.lane.b32.xlu0 %v2389_v37, %s2730_s7 }
 0x205   : > { %v1161_v60 = vpop.permute.xlu1 %1160  ;;  %v1191_v39 = vpop.permute.xlu0 %1190 }
 0x206   : > { %v1684_v14 = vsel %vm1659_vm6, %v1651_v36, %v1191_v39  ;;  %v1669_v49 = vsel %vm1659_vm6, %v1636_v35, %v1161_v60 }
 0x207   : > { %1204 = vrot.lane.b32.xlu1 %v2406_v13, %s2730_s7  ;;  %1172 = vrot.lane.b32.xlu0 %v2390_v15, %s2730_s7  ;;  %s2186_s7 = sshll.u32 %s164_s5, 4  ;;  %s2187_s7 = int_to_ptr.vmem [resolvable:$true] %s2186_s7 }
 0x208   : > { %p2670_p0 = scmp.lt.s32.totalorder %s2187_s7, %s2668_s20 }
 0x209   : > { %v1287_v57 = vpop.permute.xlu1 %1286  ;;  %v1193_v48 = vpop.permute.xlu0 %1192 }
 0x20a   : > { %v1701_v20 = vsel %vm1692_vm7, %v1668_v7, %v1287_v57  ;;  %v1685_v47 = vsel %vm1659_vm6, %v1652_v19, %v1193_v48  ;;  %v4365_v19 = vld [vmem:[#allocation16_spill] sm:$0xff] }
 0x20b   : > { %1330 = vrot.lane.b32.xlu1 %v2437_v22, %s2731_s17  ;;  %1298 = vrot.lane.b32.xlu0 %v2421_v26, %s2731_s17 }
 0x20d   : > { %v939_v62 = vpop.permute.xlu1 %938  ;;  %v1319_v24 = vpop.permute.xlu0 %1318 }
 0x20e   : > { %v1717_v2 = vsel %vm1692_vm7, %v1684_v14, %v1319_v24  ;;  %v1620_v46 = vsel %vm1593_vm4, %v4361_v6, %v939_v62  ;;  %v4363_v62 = vld [vmem:[#allocation36_spill] sm:$0xff] }
 0x20f   : > { %1332 = vrot.lane.b32.xlu1 %v2438_v33, %s2731_s17  ;;  %1300 = vrot.lane.b32.xlu0 %v2422_v8, %s2731_s17  ;;  %v4362_v8 = vld [vmem:[#allocation10_spill] sm:$0xff]  ;;  %s2663_s17 = scalar_lea.vmem %s2187_s7, 256 }
 0x210   : > { %v1605_v24 = vsel %vm1593_vm4, %v4363_v62, %v4362_v8  ;;  %p2664_p11 = scmp.ne.s32.totalorder %s2187_s7, %s2663_s17  ;;  %p2671_p1 = scmp.lt.s32.totalorder %s2669_s25, %s2663_s17 }
 0x211   : > { %v1321_v53 = vpop.permute.xlu1 %1320  ;;  %v1289_v42 = vpop.permute.xlu0 %1288 }
 0x212   : > { %v1702_v51 = vsel %vm1692_vm7, %v1669_v49, %v1289_v42  ;;  %v1718_v34 = vsel %vm1692_vm7, %v1685_v47, %v1321_v53  ;;  %v4366_v47 = vld [vmem:[#allocation43_spill] sm:$0xff]  ;;  %p2665_p12 = pnand %p2664_p11, %p2792_p5  ;;  %p2672_p2 = por %p2671_p1, %p2670_p0 }
 0x213   : > { %1458 = vrot.lane.b32.xlu1 %v2469_v5, %s2732_s30  ;;  %1426 = vrot.lane.b32.xlu0 %v2453_v25, %s2732_s30  ;;  %v4364_v5 = vld [vmem:[#allocation39_spill] sm:$0xff] }
 0x214   : > { %p2666_p13 = pneg %p2665_p12 }
 0x215   : > { %v1447_v43 = vpop.permute.xlu1 %1446  ;;  %v1415_v0 = vpop.permute.xlu0 %1414 }
 0x216   : > { %v1750_v28 = vsel %vm1725_vm8, %v1717_v2, %v1447_v43  ;;  %v1734_v45 = vsel %vm1725_vm8, %v1701_v20, %v1415_v0  ;;  %p2673_p3 = pnand %p2672_p2, %p2666_p13 }
 0x217   : > { %1460 = vrot.lane.b32.xlu1 %v2470_v1, %s2732_s30  ;;  %1428 = vrot.lane.b32.xlu0 %v2454_v29, %s2732_s30 }
 0x218   : > { %2569 = vmatprep.mubr.msk.f32.mxu0 %vm1763_vm9, %v1734_v45  ;;  %2593 = vmatprep.mubr.msk.f32.mxu1 %vm1763_vm9, %v1750_v28 }
 0x219   : > { %v1035_v4 = vpop.permute.xlu1 %1034  ;;  %v941_v55 = vpop.permute.xlu0 %940 }
 0x21a   : > { %v1637_v37 = vsel %vm1626_vm5, %v1604_v18, %v1035_v4  ;;  %v1621_v25 = vsel %vm1593_vm4, %v4364_v5, %v941_v55 }
 0x21d   : > { %v1417_v17 = vpop.permute.xlu1 %1416  ;;  %v1067_v40 = vpop.permute.xlu0 %1066 }
 0x21e   : > { %v1735_v50 = vsel %vm1725_vm8, %v1702_v51, %v1417_v17  ;;  %v1653_v44 = vsel %vm1626_vm5, %v1620_v46, %v1067_v40 }
 0x21f   : > { %2570 = vmatmul.mubr.msk.f32.gmra.mxu0 %vm1763_vm9, %v1735_v50 }
 0x221   : > { %v1037_v41 = vpop.permute.xlu1 %1036  ;;  %v1449_v21 = vpop.permute.xlu0 %1448 }
 0x222   : > { %v1751_v58 = vsel %vm1725_vm8, %v1718_v34, %v1449_v21  ;;  %v1638_v53 = vsel %vm1626_vm5, %v1605_v24, %v1037_v41  ;;  %v1606_v34 = vsel %vm1593_vm4, %v4366_v47, %v4365_v19  ;;  %v4367_v41 = vld [vmem:[#allocation5_spill] sm:$0xff] }
 0x223   : > { %2594 = vmatmul.mubr.msk.f32.gmra.mxu1 %vm1763_vm9, %v1751_v58 }
 0x225   : > { %v1163_v16 = vpop.permute.xlu1 %1162  ;;  %v1069_v30 = vpop.permute.xlu0 %1068 }
 0x226   : > { %v1670_v12 = vsel %vm1659_vm6, %v1637_v37, %v1163_v16  ;;  %v1654_v42 = vsel %vm1626_vm5, %v1621_v25, %v1069_v30  ;;  %v4368_v37 = vld [vmem:[#allocation6_spill] sm:$0xff] }
 0x229   : > { %v1165_v3 = vpop.permute.xlu1 %1164  ;;  %v1195_v61 = vpop.permute.xlu0 %1194 }
 0x22a   : > { %v1686_v13 = vsel %vm1659_vm6, %v1653_v44, %v1195_v61  ;;  %v1671_v10 = vsel %vm1659_vm6, %v1638_v53, %v1165_v3 }
 0x22d   : > { %v1291_v52 = vpop.permute.xlu1 %1290  ;;  %v1197_v38 = vpop.permute.xlu0 %1196 }
 0x22e   : > { %v1703_v15 = vsel %vm1692_vm7, %v1670_v12, %v1291_v52  ;;  %v1687_v11 = vsel %vm1659_vm6, %v1654_v42, %v1197_v38  ;;  %v4369_v12 = vld [vmem:[#allocation37_spill] sm:$0xff] }
 0x231   : > { %v943_v59 = vpop.permute.xlu1 %942  ;;  %v1323_v9 = vpop.permute.xlu0 %1322 }
 0x232   : > { %v1719_v60 = vsel %vm1692_vm7, %v1686_v13, %v1323_v9  ;;  %v1622_v21 = vsel %vm1593_vm4, %v4367_v41, %v943_v59 }
 0x235   : > { %v1325_v54 = vpop.permute.xlu1 %1324  ;;  %v1293_v32 = vpop.permute.xlu0 %1292 }
 0x236   : > { %v1720_v56 = vsel %vm1692_vm7, %v1687_v11, %v1325_v54  ;;  %v1704_v36 = vsel %vm1692_vm7, %v1671_v10, %v1293_v32 }
 0x239   : > { %v1451_v39 = vpop.permute.xlu1 %1450  ;;  %v1419_v22 = vpop.permute.xlu0 %1418 }
 0x23a   : > { %v1752_v26 = vsel %vm1725_vm8, %v1719_v60, %v1451_v39  ;;  %v1736_v27 = vsel %vm1725_vm8, %v1703_v15, %v1419_v22 }
 0x23b   : > { %2572 = vmatprep.mubr.msk.f32.mxu0 %vm1763_vm9, %v1736_v27  ;;  %2596 = vmatprep.mubr.msk.f32.mxu1 %vm1763_vm9, %v1752_v26 }
 0x23d   : > { %v945_v31 = vpop.permute.xlu1 %944  ;;  %v913_v57 = vpop.permute.xlu0 %912 }
 0x23e   : > { %v1623_v44 = vsel %vm1593_vm4, %v4368_v37, %v945_v31  ;;  %v1607_v13 = vsel %vm1593_vm4, %v4369_v12, %v913_v57 }
 0x241   : > { %v1071_v48 = vpop.permute.xlu1 %1070  ;;  %v1039_v33 = vpop.permute.xlu0 %1038 }
 0x242   : > { %v1655_v58 = vsel %vm1626_vm5, %v1622_v21, %v1071_v48  ;;  %v1639_v16 = vsel %vm1626_vm5, %v1606_v34, %v1039_v33 }
 0x245   : > { %v1453_v7 = vpop.permute.xlu1 %1452  ;;  %v1421_v14 = vpop.permute.xlu0 %1420 }
 0x246   : > { %v1753_v1 = vsel %vm1725_vm8, %v1720_v56, %v1453_v7  ;;  %v1737_v29 = vsel %vm1725_vm8, %v1704_v36, %v1421_v14 }
 0x247   : > { %2573 = vmatmul.mubr.msk.f32.gmra.mxu0 %vm1763_vm9, %v1737_v29  ;;  %2597 = vmatmul.mubr.msk.f32.gmra.mxu1 %vm1763_vm9, %v1753_v1  ;;  %v4370_v29 = vld [vmem:[#allocation11_spill] sm:$0xff] }
 0x249   : > { %v1073_v20 = vpop.permute.xlu1 %1072  ;;  %v1041_v2 = vpop.permute.xlu0 %1040 }
 0x24a   : > { %v1656_v15 = vsel %vm1626_vm5, %v1623_v44, %v1073_v20  ;;  %v1640_v60 = vsel %vm1626_vm5, %v1607_v13, %v1041_v2  ;;  %v4371_v2 = vld [vmem:[#allocation44_spill] sm:$0xff] }
 0x24d   : > { %v1199_v43 = vpop.permute.xlu1 %1198  ;;  %v1167_v0 = vpop.permute.xlu0 %1166 }
 0x24e   : > { %v1688_v30 = vsel %vm1659_vm6, %v1655_v58, %v1199_v43  ;;  %v1672_v3 = vsel %vm1659_vm6, %v1639_v16, %v1167_v0 }
 0x250   : > { %v2559_v28 = vpop.f32.mrf.mxu0 }
 0x251   : > { %v1201_v45 = vpop.permute.xlu1 %1200  ;;  %v1169_v4 = vpop.permute.xlu0 %1168 }
 0x252   : > { %v1930_v55 = vpop.f32.mrf.mxu0  ;;  %v1689_v39 = vsel %vm1659_vm6, %v1656_v15, %v1201_v45  ;;  %v1673_v22 = vsel %vm1659_vm6, %v1640_v60, %v1169_v4 }
 0x253   : > { %2089 = vxpose.xlu0.b32.start [1/16] (narrow) %v1930_v55, 8 }
 0x254   : > { %v2583_v23 = vpop.f32.mrf.mxu1 }
 0x255   : > { %v1327_v35 = vpop.permute.xlu1 %1326  ;;  %v1295_v49 = vpop.permute.xlu0 %1294 }
 0x256   : > { %v2010_v51 = vpop.f32.mrf.mxu1  ;;  %v1721_v61 = vsel %vm1692_vm7, %v1688_v30, %v1327_v35  ;;  %v1705_v52 = vsel %vm1692_vm7, %v1672_v3, %v1295_v49 }
 0x257   : > { %2121 = vxpose.xlu1.b32.start [1/16] (narrow) %v2010_v51, 8  ;;  %2090 = vxpose.xlu0.b32.cont [2/16] (narrow) %v2559_v28, 8  ;;  %v4372_v51 = vld [vmem:[#allocation17_spill] sm:$0xff] }
 0x259   : > { %v947_v17 = vpop.permute.xlu1 %946  ;;  %v915_v40 = vpop.permute.xlu0 %914 }
 0x25a   : > { %v1624_v20 = vsel %vm1593_vm4, %v4370_v29, %v947_v17  ;;  %v1608_v43 = vsel %vm1593_vm4, %v4371_v2, %v915_v40 }
 0x25b   : > { %2122 = vxpose.xlu1.b32.cont [2/16] (narrow) %v2583_v23, 8 }
 0x25d   : > { %v1329_v63 = vpop.permute.xlu1 %1328  ;;  %v1297_v50 = vpop.permute.xlu0 %1296 }
 0x25e   : > { %v1722_v26 = vsel %vm1692_vm7, %v1689_v39, %v1329_v63  ;;  %v1706_v27 = vsel %vm1692_vm7, %v1673_v22, %v1297_v50  ;;  %v4373_v63 = vld [vmem:[#allocation38_spill] sm:$0xff] }
 0x261   : > { %v1455_v38 = vpop.permute.xlu1 %1454  ;;  %v1423_v9 = vpop.permute.xlu0 %1422 }
 0x262   : > { %v1754_v54 = vsel %vm1725_vm8, %v1721_v61, %v1455_v38  ;;  %v1738_v32 = vsel %vm1725_vm8, %v1705_v52, %v1423_v9 }
 0x263   : > { %2575 = vmatprep.mubr.msk.f32.mxu0 %vm1763_vm9, %v1738_v32  ;;  %2599 = vmatprep.mubr.msk.f32.mxu1 %vm1763_vm9, %v1754_v54 }
 0x265   : > { %v949_v59 = vpop.permute.xlu1 %948  ;;  %v917_v18 = vpop.permute.xlu0 %916 }
 0x266   : > { %v1625_v17 = vsel %vm1593_vm4, %v4372_v51, %v949_v59  ;;  %v1609_v40 = vsel %vm1593_vm4, %v4373_v63, %v917_v18 }
 0x269   : > { %v1075_v6 = vpop.permute.xlu1 %1074  ;;  %v1043_v46 = vpop.permute.xlu0 %1042 }
 0x26a   : > { %v1657_v0 = vsel %vm1626_vm5, %v1624_v20, %v1075_v6  ;;  %v1641_v28 = vsel %vm1626_vm5, %v1608_v43, %v1043_v46 }
 0x26d   : > { %v1457_v48 = vpop.permute.xlu1 %1456  ;;  %v1425_v33 = vpop.permute.xlu0 %1424 }
 0x26e   : > { %v1755_v8 = vsel %vm1725_vm8, %v1722_v26, %v1457_v48  ;;  %v1739_v31 = vsel %vm1725_vm8, %v1706_v27, %v1425_v33 }
 0x26f   : > { %2576 = vmatmul.mubr.msk.f32.gmra.mxu0 %vm1763_vm9, %v1739_v31  ;;  %2600 = vmatmul.mubr.msk.f32.gmra.mxu1 %vm1763_vm9, %v1755_v8 }
 0x271   : > { %v1077_v57 = vpop.permute.xlu1 %1076  ;;  %v1045_v62 = vpop.permute.xlu0 %1044 }
 0x272   : > { %v1658_v47 = vsel %vm1626_vm5, %v1625_v17, %v1077_v57  ;;  %v1642_v34 = vsel %vm1626_vm5, %v1609_v40, %v1045_v62 }
 0x274   : > { %v2562_v24 = vpop.f32.mrf.mxu0 }
 0x275   : > { %v1203_v5 = vpop.permute.xlu1 %1202  ;;  %v1171_v25 = vpop.permute.xlu0 %1170 }
 0x276   : > { %v1940_v53 = vpop.f32.mrf.mxu0  ;;  %v1690_v45 = vsel %vm1659_vm6, %v1657_v0, %v1203_v5  ;;  %v1674_v4 = vsel %vm1659_vm6, %v1641_v28, %v1171_v25 }
 0x277   : > { %2091 = vxpose.xlu0.b32.cont [3/16] (narrow) %v1940_v53, 8 }
 0x278   : > { %v2586_v42 = vpop.f32.mrf.mxu1 }
 0x279   : > { %v1205_v10 = vpop.permute.xlu1 %1204  ;;  %v1173_v11 = vpop.permute.xlu0 %1172 }
 0x27a   : > { %v2020_v56 = vpop.f32.mrf.mxu1  ;;  %v1691_v41 = vsel %vm1659_vm6, %v1658_v47, %v1205_v10  ;;  %v1675_v21 = vsel %vm1659_vm6, %v1642_v34, %v1173_v11 }
 0x27b   : > { %2123 = vxpose.xlu1.b32.cont [3/16] (narrow) %v2020_v56, 8  ;;  %2092 = vxpose.xlu0.b32.cont [4/16] (narrow) %v2562_v24, 8 }
 0x27d   : > { %v1331_v36 = vpop.permute.xlu1 %1330  ;;  %v1299_v7 = vpop.permute.xlu0 %1298 }
 0x27e   : > { %v1723_v55 = vsel %vm1692_vm7, %v1690_v45, %v1331_v36  ;;  %v1707_v23 = vsel %vm1692_vm7, %v1674_v4, %v1299_v7 }
 0x27f   : > { %2124 = vxpose.xlu1.b32.cont [4/16] (narrow) %v2586_v42, 8 }
 0x281   : > { %v1333_v14 = vpop.permute.xlu1 %1332  ;;  %v1301_v1 = vpop.permute.xlu0 %1300 }
 0x282   : > { %v1724_v58 = vsel %vm1692_vm7, %v1691_v41, %v1333_v14  ;;  %v1708_v16 = vsel %vm1692_vm7, %v1675_v21, %v1301_v1 }
 0x285   : > { %v1459_v35 = vpop.permute.xlu1 %1458  ;;  %v1427_v49 = vpop.permute.xlu0 %1426 }
 0x286   : > { %v1756_v50 = vsel %vm1725_vm8, %v1723_v55, %v1459_v35  ;;  %v1740_v19 = vsel %vm1725_vm8, %v1707_v23, %v1427_v49 }
 0x287   : > { %2578 = vmatprep.mubr.msk.f32.mxu0 %vm1763_vm9, %v1740_v19  ;;  %2602 = vmatprep.mubr.msk.f32.mxu1 %vm1763_vm9, %v1756_v50 }
 0x289   : > { %v1461_v30 = vpop.permute.xlu1 %1460  ;;  %v1429_v3 = vpop.permute.xlu0 %1428 }
 0x28a   : > { %v1757_v61 = vsel %vm1725_vm8, %v1724_v58, %v1461_v30  ;;  %v1741_v52 = vsel %vm1725_vm8, %v1708_v16, %v1429_v3 }
 0x28b   : > { %2579 = vmatmul.mubr.msk.f32.gmra.mxu0 %vm1763_vm9, %v1741_v52  ;;  %2603 = vmatmul.mubr.msk.f32.gmra.mxu1 %vm1763_vm9, %v1757_v61 }
 0x298   : > { %v2565_v38 = vpop.f32.mrf.mxu0 }
 0x29a   : > { %v1950_v9 = vpop.f32.mrf.mxu0 }
 0x29b   : > { %2093 = vxpose.xlu0.b32.cont [5/16] (narrow) %v1950_v9, 8 }
 0x29c   : > { %v2589_v54 = vpop.f32.mrf.mxu1 }
 0x29e   : > { %v2030_v32 = vpop.f32.mrf.mxu1 }
 0x29f   : > { %2125 = vxpose.xlu1.b32.cont [5/16] (narrow) %v2030_v32, 8  ;;  %2094 = vxpose.xlu0.b32.cont [6/16] (narrow) %v2565_v38, 8 }
 0x2a3   : > { %2126 = vxpose.xlu1.b32.cont [6/16] (narrow) %v2589_v54, 8 }
 0x2bc   : > { %v2568_v59 = vpop.f32.mrf.mxu0 }
 0x2be   : > { %v1960_v18 = vpop.f32.mrf.mxu0 }
 0x2bf   : > { %2095 = vxpose.xlu0.b32.cont [7/16] (narrow) %v1960_v18, 8 }
 0x2c0   : > { %v2592_v6 = vpop.f32.mrf.mxu1 }
 0x2c2   : > { %v2040_v46 = vpop.f32.mrf.mxu1 }
 0x2c3   : > { %2127 = vxpose.xlu1.b32.cont [7/16] (narrow) %v2040_v46, 8  ;;  %2096 = vxpose.xlu0.b32.cont [8/16] (narrow) %v2568_v59, 8 }
 0x2c7   : > { %2128 = vxpose.xlu1.b32.cont [8/16] (narrow) %v2592_v6, 8 }
 0x2df   : > { %v2571_v37 = vpop.f32.mrf.mxu0 }
 0x2e1   : > { %v1970_v44 = vpop.f32.mrf.mxu0 }
 0x2e2   : > { %2097 = vxpose.xlu0.b32.cont [9/16] (narrow) %v1970_v44, 8 }
 0x2e3   : > { %v2595_v12 = vpop.f32.mrf.mxu1 }
 0x2e5   : > { %v2050_v13 = vpop.f32.mrf.mxu1 }
 0x2e6   : > { %2129 = vxpose.xlu1.b32.cont [9/16] (narrow) %v2050_v13, 8  ;;  %2098 = vxpose.xlu0.b32.cont [10/16] (narrow) %v2571_v37, 8 }
 0x2ea   : > { %2130 = vxpose.xlu1.b32.cont [10/16] (narrow) %v2595_v12, 8 }
 0x307   : > { %v2574_v15 = vpop.f32.mrf.mxu0  ;;  %v2598_v60 = vpop.f32.mrf.mxu1 }
 0x309   : > { %v1980_v39 = vpop.f32.mrf.mxu0  ;;  %v2060_v22 = vpop.f32.mrf.mxu1 }
 0x30a   : > { %2131 = vxpose.xlu1.b32.cont [11/16] (narrow) %v2060_v22, 8  ;;  %2099 = vxpose.xlu0.b32.cont [11/16] (narrow) %v1980_v39, 8 }
 0x30e   : > { %2132 = vxpose.xlu1.b32.cont [12/16] (narrow) %v2598_v60, 8  ;;  %2100 = vxpose.xlu0.b32.cont [12/16] (narrow) %v2574_v15, 8 }
 0x32f   : > { %v2577_v26 = vpop.f32.mrf.mxu0  ;;  %v2601_v27 = vpop.f32.mrf.mxu1 }
 0x331   : > { %v1990_v48 = vpop.f32.mrf.mxu0  ;;  %v2070_v33 = vpop.f32.mrf.mxu1 }
 0x332   : > { %2133 = vxpose.xlu1.b32.cont [13/16] (narrow) %v2070_v33, 8  ;;  %2101 = vxpose.xlu0.b32.cont [13/16] (narrow) %v1990_v48, 8 }
 0x336   : > { %2134 = vxpose.xlu1.b32.cont [14/16] (narrow) %v2601_v27, 8  ;;  %2102 = vxpose.xlu0.b32.cont [14/16] (narrow) %v2577_v26, 8 }
 0x34b   : > { %v2580_v8 = vpop.f32.mrf.mxu0  ;;  %v2604_v31 = vpop.f32.mrf.mxu1 }
 0x34d   : > { %v2000_v57 = vpop.f32.mrf.mxu0  ;;  %v2080_v62 = vpop.f32.mrf.mxu1 }
 0x34e   : > { %2135 = vxpose.xlu1.b32.cont [15/16] (narrow) %v2080_v62, 8  ;;  %2103 = vxpose.xlu0.b32.cont [15/16] (narrow) %v2000_v57, 8 }
 0x352   : > { %2136 = vxpose.xlu1.b32.end [16/16] (narrow) %v2604_v31, 8  ;;  %2104 = vxpose.xlu0.b32.end [16/16] (narrow) %v2580_v8, 8 }
 0x392   : > { %v2137_v24 = vpop.trf.xlu1  ;;  %v2105_v5 = vpop.trf.xlu0 }
 0x393   : > { %2154 = vst [vmem:[%s164_s5 + $0x8] sm:$0xff] %v2137_v24  ;;  %v2159_v25 = vmul.f32 %v2137_v24, %v2137_v24  ;;  %2153 = vst [vmem:[%s164_s5] sm:$0xff] %v2105_v5  ;;  %v2155_v53 = vadd.f32 %v2137_v24, %v2105_v5  ;;  %v2158_v42 = vmul.f32 %v2105_v5, %v2105_v5 }
 0x395   : > { %2156 = vadd.xlane.f32.xlu0 %v2155_v53  ;;  %v2160_v10 = vadd.f32 %v2159_v25, %v2158_v42 }
 0x397   : > { %2161 = vadd.xlane.f32.xlu1 %v2160_v10 }
 0x398   : > { %2676 = shalt.err (!%p2673_p3)
}
 0x399   : > { %s2677_s16 = scalar_lea.hbm %s2184_s10, 256  ;;  %s2681_s29 = scalar_lea.hbm %s4217_s2, 512 }
 0x39a   : > { %p2678_p4 = scmp.ne.s32.totalorder %s2184_s10, %s2677_s16  ;;  %p2682_p9 = scmp.lt.s32.totalorder %s2184_s10, %s4217_s2 }
 0x39b   : > { %p2683_p10 = scmp.lt.s32.totalorder %s2681_s29, %s2677_s16 }
 0x39c   : > { %p2679_p7 = pnand %p2678_p4, %p2792_p5 }
 0x39d   : > { %p2684_p11 = por %p2683_p10, %p2682_p9 }
 0x39e   : > { %p2680_p8 = pneg %p2679_p7 }
 0x3a0   : > { %p2685_p12 = pnand %p2684_p11, %p2680_p8 }
 0x3a2   : > { %2688 = shalt.err (!%p2685_p12)
}
 0x3a3   : > { %2616 = dma.vmem_to_hbm [thread:$0]  (%p2792_p5), %s2187_s7, 256, %s2184_s10, %s2168_s11   ;;  %vm2163_vm10 = vcmask 7168   ;;  %vm2165_vm11 = vcmask 15360  }
 0x3a4   : > { %s2278_s4 = sshll.u32 %s2804_s24, 3 }
 0x3a5   : > { %s179_s8 = scalar_lea.vmem %s4218_s3, %s2278_s4 }
 0x41e   : > { %v2157_v11 = vpop.xlane.xlu0 %2156 }
 0x420   : > { %v2162_v56 = vpop.xlane.xlu1 %2161 }
 0x421   : > { %v2164_v36 = vsel %vm2163_vm10, %v2157_v11, %v2162_v56 }
 0x422   : > { %2166 = vst.msk [vmem:[%s179_s8] sm:$0xff] %vm2165_vm11, %v2164_v36 }
 0x423 PF: > { %p2622_p13 = scmp.ge.s32.totalorder %s2723_s15, 2  ;;  %s2201_s9 = sand.u32 1, %s2711_s12  }
 0x424   : > { %s2202_s22 = scalar_lea.sflag [#allocation3], %s2201_s9 }
 0x425   : > { %p2619_p0 = pnand %p2622_p13, %p2796_p6 }
 0x427   : > { %p2620_p5 = pneg %p2619_p0 }
 0x429   : > { %2706 = dma.done.wait (%p2620_p5), %s2202_s22, 256  }
 0x42a   : > { %2708 = vsyncadd (%p2620_p5), %s2202_s22, 4294967040  ;;  %p14_p1 = scmp.ge.s32.totalorder %s2779_s18, 4   ;;  %s4374_s12 = smov %s2715_s13 }
 0x42b   : > { %s4375_s13 = smov %s2719_s14  ;;  %s4376_s14 = smov %s2790_s21 }
 0x42c   : > { %s4377_s15 = smov %s2779_s18  ;;  %16 = sbr.rel (!%p14_p1) target bundleno = 3 (0x3), region = 77 }
 0x431   :  { %2214 = vsyncpa [#allocation3], 1 }
 0x432   :  { %2216 = vsyncpa [#allocation3 + $0x1], 1 }

</bundles_post_ra>
